<compile_context>
chip_gen: v7x
topology: tpu7x:2x2x1
jax: 0.10.0
libtpu: 0.0.40
codegen_flags: <defaults>
</compile_context>

<pallas_src>
import functools

import jax
import jax.numpy as jnp
from jax.experimental import pallas as pl
from jax.experimental.pallas import tpu as pltpu

LANES = 128              # internal channel padding (TPU lane width)
KTAPS = 5                # every layer expressed as a 5-tap conv (k=3 layer zero-padded)
PAD = 2                  # left time padding (k=5, padding=2)
_SCRATCH_BUDGET = 12 * 1024 * 1024   # activation-scratch budget used to pick TB


def _round8(n):
    return ((n + 7) // 8) * 8


def _layer_dims(t0):
    """Per-layer (t_in, t_out, stride) for the 8 conv layers."""
    dims = []
    t = t0
    for _ in range(7):                 # Conv1d(k=5, stride=2, pad=2): ceil(t/2)
        t_out = (t - 1) // 2 + 1
        dims.append((t, t_out, 2))
        t = t_out
    dims.append((t, t, 1))             # Conv1d(8, 1, k=3, pad=1)
    return dims


def _pick_tb(batch, per_sample_bytes, budget_bytes, cap=8):
    """Samples per grid step: biggest divisor of B that fits the scratch budget,
    but keep >=2 grid steps when B > 1 (v7x has two TensorCores)."""
    divisors = [d for d in range(1, batch + 1) if batch % d == 0]
    tb = 1
    for d in divisors:
        if d <= cap and d * per_sample_bytes <= budget_bytes:
            tb = d
    if batch > 1 and batch // tb < 2:
        smaller = [d for d in divisors if d < tb and batch // d >= 2]
        if smaller:
            tb = max(smaller)
    return tb


# ---------------------------------------------------------------------------
# Fused kernel: whole discriminator for TB batch elements per grid step
# ---------------------------------------------------------------------------
def _disc_fused_kernel(x_ref, w_ref, p_ref, o_ref, *bufs, cfg, t_pads, tb, cin):
    """x_ref: (TB, T0, Cin)     bf16 input (channels-last, NOT lane padded)
    w_ref: (L, 640, 128)     bf16 im2col weights (row index = tap*128 + cin)
    p_ref: (L, 3, 128)       f32 [bias, bn_scale, bn_shift] per layer
    o_ref: (TB, T_last, 128) f32 output (only lane 0 is the real channel)
    bufs : per-layer activation scratch, (TB * t_pads[l], 128) f32
    cfg  : static tuple of (t_in, t_out, stride, slope, has_bn) per layer
    """
    n_layers = len(cfg)
    t0 = cfg[0][0]

    # ---- zero ONLY the time-pad rows of every per-sample slab ---------------
    # The live region [PAD, PAD+t_in) is fully overwritten every step, so no
    # stale data can leak between grid steps.  Done every step (cheap: a few
    # rows per buffer) rather than guarded on program_id==0, because with
    # dimension_semantics=("parallel",) a second TensorCore starts at a
    # nonzero program_id with its own, uninitialized, scratch.
    for l in range(n_layers):
        tp = t_pads[l]
        t_live = cfg[l][0]
        tail = tp - PAD - t_live
        for s in range(tb):
            base = s * tp
            bufs[l][pl.ds(base, PAD), :] = jnp.zeros((PAD, LANES), jnp.float32)
            if tail > 0:
                bufs[l][pl.ds(base + PAD + t_live, tail), :] = jnp.zeros(
                    (tail, LANES), jnp.float32)

    # ---- stage the input into the layer-0 buffer ----------------------------
    # Lane padding Cin -> 128 is done with a tiny identity-embed matmul: the
    # MXU scatters the Cin real channels into lanes [0, Cin) and zero-fills the
    # rest (and upcasts to f32) in a single lane-dense store.
    if cin < LANES:
        row = jax.lax.broadcasted_iota(jnp.int32, (cin, LANES), 0)
        col = jax.lax.broadcasted_iota(jnp.int32, (cin, LANES), 1)
        emb = (row == col).astype(jnp.bfloat16)        # (Cin, 128)
    else:
        emb = None
    tp0 = t_pads[0]
    for s in range(tb):
        xs = x_ref[s]                                  # (T0, Cin) bf16
        if emb is not None:
            wide = jnp.dot(xs, emb, preferred_element_type=jnp.float32)
        else:
            wide = xs.astype(jnp.float32)
        bufs[0][pl.ds(s * tp0 + PAD, t0), :] = wide

    # ---- conv stack ----------------------------------------------------------
    for l, (t_in, t_out, stride, slope, has_bn) in enumerate(cfg):
        in_buf = bufs[l]
        tp_in = t_pads[l]

        # im2col operand, M = TB * t_out rows, K = KTAPS*128 lanes.  Stride-2
        # layers read only the rows that contribute to kept outputs (strided
        # sublane loads); all slicing offsets are static Python ints.
        rows = []
        for s in range(tb):
            base = s * tp_in
            cols = []
            for k in range(KTAPS):
                if stride > 1 and t_out > 1:
                    cols.append(in_buf[pl.ds(base + k, t_out, stride=stride), :])
                else:
                    cols.append(in_buf[pl.ds(base + k, t_out), :])
            rows.append(jnp.concatenate(cols, axis=-1))        # (t_out, 640)
        a = jnp.concatenate(rows, axis=0) if tb > 1 else rows[0]
        a = a.astype(jnp.bfloat16)

        # Single MXU matmul per layer, f32 accumulation.
        y = jnp.dot(a, w_ref[l], preferred_element_type=jnp.float32)

        pvec = p_ref[l]                         # (3, 128) f32
        y = y + pvec[0:1, :]                    # conv bias
        if slope != 1.0:                        # LeakyReLU(0.2)
            y = jnp.where(y >= 0.0, y, y * slope)
        if has_bn:                              # BatchNorm1d (eval) affine
            y = y * pvec[1:2, :] + pvec[2:3, :]

        if l + 1 < n_layers:
            nxt = bufs[l + 1]
            tp_out = t_pads[l + 1]
            for s in range(tb):                 # write ONLY the live region
                nxt[pl.ds(s * tp_out + PAD, t_out), :] = y[s * t_out:(s + 1) * t_out, :]
        else:
            for s in range(tb):                 # lane-dense final store
                o_ref[s] = y[s * t_out:(s + 1) * t_out, :].astype(o_ref.dtype)


# ---------------------------------------------------------------------------
# Wrapper
# ---------------------------------------------------------------------------
def discriminator_forward(x_nct, params, samples_per_step=None):
    """x_nct: (B, Cin, T) -> (B, 1, T_last), matching the PyTorch module."""
    B, cin, t0 = x_nct.shape
    assert cin <= LANES  # TODO(synk): feature_in_dim > 128 would need Cin tiling
    w_stack, p_stack = params
    n_layers = w_stack.shape[0]

    dims = _layer_dims(t0)
    t_last = dims[-1][1]

    # Static per-layer config: (t_in, t_out, stride, slope, has_bn); last layer
    # is a plain conv (identity activation, no BN).
    cfg = tuple(
        (t_in, t_out, stride,
         0.2 if l < n_layers - 1 else 1.0,
         l < n_layers - 1)
        for l, (t_in, t_out, stride) in enumerate(dims))
    # Padded per-sample slab length for each layer's input buffer.
    t_pads = tuple(_round8(max(stride * (t_out - 1) + KTAPS, t_in + PAD))
                   for (t_in, t_out, stride) in dims)

    per_sample_scratch = sum(t_pads) * LANES * 4
    tb = samples_per_step if samples_per_step else _pick_tb(
        B, per_sample_scratch, _SCRATCH_BUDGET)
    assert B % tb == 0
    grid_b = B // tb

    # Channels-last, bf16 (halves input DMA); NO lane padding in HBM — that
    # would inflate input traffic 128/Cin-fold plus an extra XLA pad pass.
    x = jnp.transpose(x_nct, (0, 2, 1)).astype(jnp.bfloat16)   # (B, T0, Cin)

    # Explicit VMEM budget (double-buffered in/out, weights, scratch, slack).
    bytes_scratch = tb * per_sample_scratch
    bytes_in = 2 * tb * t0 * cin * 2
    bytes_w = 2 * (w_stack.size * 2 + p_stack.size * 4)
    bytes_out = 2 * tb * t_last * LANES * 4
    vmem_limit = int(min(64 << 20,
                         max(16 << 20,
                             2 * (bytes_scratch + bytes_in + bytes_w + bytes_out)
                             + (2 << 20))))

    kernel = functools.partial(_disc_fused_kernel, cfg=cfg, t_pads=t_pads,
                               tb=tb, cin=cin)
    out = pl.pallas_call(
        kernel,
        out_shape=jax.ShapeDtypeStruct((B, t_last, LANES), jnp.float32),
        grid=(grid_b,),
        in_specs=[
            pl.BlockSpec((tb, t0, cin), lambda b: (b, 0, 0)),
            # Weights/params have a constant index_map, so they are DMA'd once
            # and revisited across grid steps.  (Single-buffering them via
            # pl.Buffered(1) was skipped to keep the known-good pipeline path;
            # the cost is ~1.3 MiB of idle second buffer.)
            pl.BlockSpec((n_layers, KTAPS * LANES, LANES), lambda b: (0, 0, 0)),
            pl.BlockSpec((n_layers, 3, LANES), lambda b: (0, 0, 0)),
        ],
        out_specs=pl.BlockSpec((tb, t_last, LANES), lambda b: (b, 0, 0)),
        scratch_shapes=[pltpu.VMEM((tb * tp, LANES), jnp.float32)
                        for tp in t_pads],
        compiler_params=pltpu.CompilerParams(
            dimension_semantics=("parallel",),
            vmem_limit_bytes=vmem_limit),
    )(x, w_stack, p_stack)

    # Keep only the real output channel, back to PyTorch (B, C, T) layout.
    return jnp.transpose(out[:, :, :1], (0, 2, 1))


# ---------------------------------------------------------------------------
# Deterministic synthetic parameters (Conv1d + folded eval-mode BatchNorm1d)
# ---------------------------------------------------------------------------
def init_params(key, cin):
    chans = [cin, 64, 64, 32, 32, 16, 16, 8, 1]
    ksizes = [5, 5, 5, 5, 5, 5, 5, 3]
    n_layers = len(ksizes)
    keys = iter(jax.random.split(key, 8 * n_layers))

    w_rows, p_rows = [], []
    for l in range(n_layers):
        ci, co, k = chans[l], chans[l + 1], ksizes[l]
        w = 0.1 * jax.random.normal(next(keys), (k, ci, co), jnp.float32)
        b = 0.1 * jax.random.normal(next(keys), (co,), jnp.float32)
        if l < n_layers - 1:                       # BatchNorm1d (eval) folded
            gamma = 1.0 + 0.1 * jax.random.normal(next(keys), (co,), jnp.float32)
            beta = 0.1 * jax.random.normal(next(keys), (co,), jnp.float32)
            mean = 0.1 * jax.random.normal(next(keys), (co,), jnp.float32)
            var = 1.0 + jnp.abs(jax.random.normal(next(keys), (co,), jnp.float32))
            scale = gamma / jnp.sqrt(var + 1e-5)
            shift = beta - mean * scale
        else:
            scale = jnp.ones((co,), jnp.float32)
            shift = jnp.zeros((co,), jnp.float32)

        # Embed into a zero (KTAPS, 128, 128) im2col weight.  A k=3 / pad=1
        # conv equals a k=5 / pad=2 conv whose first and last taps are zero.
        w_full = jnp.zeros((KTAPS, LANES, LANES), jnp.float32)
        off = (KTAPS - k) // 2
        w_full = w_full.at[off:off + k, :ci, :co].set(w)
        w_rows.append(w_full.reshape(KTAPS * LANES, LANES))

        p_full = jnp.zeros((3, LANES), jnp.float32)
        p_full = p_full.at[1, :].set(1.0)          # pad-lane scale stays 1
        p_full = p_full.at[0, :co].set(b)
        p_full = p_full.at[1, :co].set(scale)
        p_full = p_full.at[2, :co].set(shift)      # pad-lane shift stays 0
        p_rows.append(p_full)

    w_stack = jnp.stack(w_rows).astype(jnp.bfloat16)   # (8, 640, 128) bf16
    p_stack = jnp.stack(p_rows)                        # (8, 3, 128)   f32
    return (w_stack, p_stack)


# ---------------------------------------------------------------------------
if __name__ == "__main__":
    key = jax.random.PRNGKey(0)
    kx, kp = jax.random.split(key)

    B, Cin, T = 2, 16, 64
    x = jax.random.normal(kx, (B, Cin, T), jnp.float32)
    params = init_params(kp, Cin)

    fwd = jax.jit(discriminator_forward)
    out = fwd(x, params)
    jax.block_until_ready(out)

    t_last = _layer_dims(T)[-1][1]
    assert out.shape == (B, 1, t_last), out.shape
    assert bool(jnp.all(jnp.isfinite(out)))
    print("KERNEL_OK")
</pallas_src>

<mosaic_0001>
module attributes {stable_mosaic.version = 11 : i64} {
  func.func @_disc_fused_kernel(%arg0: i32, %arg1: memref<1x64x16xbf16, #tpu.memory_space<vmem>>, %arg2: memref<8x640x128xbf16, #tpu.memory_space<vmem>>, %arg3: memref<8x3x128xf32, #tpu.memory_space<vmem>>, %arg4: memref<1x1x128xf32, #tpu.memory_space<vmem>>, %arg5: memref<72x128xf32, #tpu.memory_space<vmem>>, %arg6: memref<40x128xf32, #tpu.memory_space<vmem>>, %arg7: memref<24x128xf32, #tpu.memory_space<vmem>>, %arg8: memref<16x128xf32, #tpu.memory_space<vmem>>, %arg9: memref<8x128xf32, #tpu.memory_space<vmem>>, %arg10: memref<8x128xf32, #tpu.memory_space<vmem>>, %arg11: memref<8x128xf32, #tpu.memory_space<vmem>>, %arg12: memref<8x128xf32, #tpu.memory_space<vmem>>) attributes {dimension_semantics = [#tpu.dimension_semantics<parallel>], iteration_bounds = array<i64: 2>, scalar_prefetch = 0 : i64, scratch_operands = 8 : i64, tpu.core_type = #tpu.core_type<tc>, window_params = [{transform_indices = @transform_0, window_bounds = array<i64: 1, 64, 16>}, {pipeline_mode = #tpu.pipeline_mode<synchronous>, transform_indices = @transform_1, window_bounds = array<i64: 8, 640, 128>}, {pipeline_mode = #tpu.pipeline_mode<synchronous>, transform_indices = @transform_2, window_bounds = array<i64: 8, 3, 128>}, {transform_indices = @transform_3, window_bounds = array<i64: 1, 1, 128>}]} {
    %cst = arith.constant 0.000000e+00 : f32
    %0 = vector.broadcast %cst : f32 to vector<2x128xf32>
    %c0 = arith.constant 0 : index
    %c0_0 = arith.constant 0 : index
    %1 = vector.load %arg5[%c0, %c0_0] : memref<72x128xf32, #tpu.memory_space<vmem>>, vector<2x128xf32>
    tpu.vector_store %arg5[%c0, %c0_0], %0 {strides = array<i32>} : memref<72x128xf32, #tpu.memory_space<vmem>>, vector<2x128xf32>,
    %cst_1 = arith.constant 0.000000e+00 : f32
    %2 = vector.broadcast %cst_1 : f32 to vector<6x128xf32>
    %c66 = arith.constant 66 : index
    %c0_2 = arith.constant 0 : index
    %3 = vector.load %arg5[%c66, %c0_2] : memref<72x128xf32, #tpu.memory_space<vmem>>, vector<6x128xf32>
    tpu.vector_store %arg5[%c66, %c0_2], %2 {strides = array<i32>} : memref<72x128xf32, #tpu.memory_space<vmem>>, vector<6x128xf32>,
    %cst_3 = arith.constant 0.000000e+00 : f32
    %4 = vector.broadcast %cst_3 : f32 to vector<2x128xf32>
    %c0_4 = arith.constant 0 : index
    %c0_5 = arith.constant 0 : index
    %5 = vector.load %arg6[%c0_4, %c0_5] : memref<40x128xf32, #tpu.memory_space<vmem>>, vector<2x128xf32>
    tpu.vector_store %arg6[%c0_4, %c0_5], %4 {strides = array<i32>} : memref<40x128xf32, #tpu.memory_space<vmem>>, vector<2x128xf32>,
    %cst_6 = arith.constant 0.000000e+00 : f32
    %6 = vector.broadcast %cst_6 : f32 to vector<6x128xf32>
    %c34 = arith.constant 34 : index
    %c0_7 = arith.constant 0 : index
    %7 = vector.load %arg6[%c34, %c0_7] : memref<40x128xf32, #tpu.memory_space<vmem>>, vector<6x128xf32>
    tpu.vector_store %arg6[%c34, %c0_7], %6 {strides = array<i32>} : memref<40x128xf32, #tpu.memory_space<vmem>>, vector<6x128xf32>,
    %cst_8 = arith.constant 0.000000e+00 : f32
    %8 = vector.broadcast %cst_8 : f32 to vector<2x128xf32>
    %c0_9 = arith.constant 0 : index
    %c0_10 = arith.constant 0 : index
    %9 = vector.load %arg7[%c0_9, %c0_10] : memref<24x128xf32, #tpu.memory_space<vmem>>, vector<2x128xf32>
    tpu.vector_store %arg7[%c0_9, %c0_10], %8 {strides = array<i32>} : memref<24x128xf32, #tpu.memory_space<vmem>>, vector<2x128xf32>,
    %cst_11 = arith.constant 0.000000e+00 : f32
    %10 = vector.broadcast %cst_11 : f32 to vector<6x128xf32>
    %c18 = arith.constant 18 : index
    %c0_12 = arith.constant 0 : index
    %11 = vector.load %arg7[%c18, %c0_12] : memref<24x128xf32, #tpu.memory_space<vmem>>, vector<6x128xf32>
    tpu.vector_store %arg7[%c18, %c0_12], %10 {strides = array<i32>} : memref<24x128xf32, #tpu.memory_space<vmem>>, vector<6x128xf32>,
    %cst_13 = arith.constant 0.000000e+00 : f32
    %12 = vector.broadcast %cst_13 : f32 to vector<2x128xf32>
    %c0_14 = arith.constant 0 : index
    %c0_15 = arith.constant 0 : index
    %13 = vector.load %arg8[%c0_14, %c0_15] : memref<16x128xf32, #tpu.memory_space<vmem>>, vector<2x128xf32>
    tpu.vector_store %arg8[%c0_14, %c0_15], %12 {strides = array<i32>} : memref<16x128xf32, #tpu.memory_space<vmem>>, vector<2x128xf32>,
    %cst_16 = arith.constant 0.000000e+00 : f32
    %14 = vector.broadcast %cst_16 : f32 to vector<6x128xf32>
    %c10 = arith.constant 10 : index
    %c0_17 = arith.constant 0 : index
    %15 = vector.load %arg8[%c10, %c0_17] : memref<16x128xf32, #tpu.memory_space<vmem>>, vector<6x128xf32>
    tpu.vector_store %arg8[%c10, %c0_17], %14 {strides = array<i32>} : memref<16x128xf32, #tpu.memory_space<vmem>>, vector<6x128xf32>,
    %cst_18 = arith.constant 0.000000e+00 : f32
    %16 = vector.broadcast %cst_18 : f32 to vector<2x128xf32>
    %c0_19 = arith.constant 0 : index
    %c0_20 = arith.constant 0 : index
    %17 = vector.load %arg9[%c0_19, %c0_20] : memref<8x128xf32, #tpu.memory_space<vmem>>, vector<2x128xf32>
    tpu.vector_store %arg9[%c0_19, %c0_20], %16 {strides = array<i32>} : memref<8x128xf32, #tpu.memory_space<vmem>>, vector<2x128xf32>,
    %cst_21 = arith.constant 0.000000e+00 : f32
    %18 = vector.broadcast %cst_21 : f32 to vector<2x128xf32>
    %c6 = arith.constant 6 : index
    %c0_22 = arith.constant 0 : index
    %19 = vector.load %arg9[%c6, %c0_22] : memref<8x128xf32, #tpu.memory_space<vmem>>, vector<2x128xf32>
    tpu.vector_store %arg9[%c6, %c0_22], %18 {strides = array<i32>} : memref<8x128xf32, #tpu.memory_space<vmem>>, vector<2x128xf32>,
    %cst_23 = arith.constant 0.000000e+00 : f32
    %20 = vector.broadcast %cst_23 : f32 to vector<2x128xf32>
    %c0_24 = arith.constant 0 : index
    %c0_25 = arith.constant 0 : index
    %21 = vector.load %arg10[%c0_24, %c0_25] : memref<8x128xf32, #tpu.memory_space<vmem>>, vector<2x128xf32>
    tpu.vector_store %arg10[%c0_24, %c0_25], %20 {strides = array<i32>} : memref<8x128xf32, #tpu.memory_space<vmem>>, vector<2x128xf32>,
    %cst_26 = arith.constant 0.000000e+00 : f32
    %22 = vector.broadcast %cst_26 : f32 to vector<4x128xf32>
    %c4 = arith.constant 4 : index
    %c0_27 = arith.constant 0 : index
    %23 = vector.load %arg10[%c4, %c0_27] : memref<8x128xf32, #tpu.memory_space<vmem>>, vector<4x128xf32>
    tpu.vector_store %arg10[%c4, %c0_27], %22 {strides = array<i32>} : memref<8x128xf32, #tpu.memory_space<vmem>>, vector<4x128xf32>,
    %cst_28 = arith.constant 0.000000e+00 : f32
    %24 = vector.broadcast %cst_28 : f32 to vector<2x128xf32>
    %c0_29 = arith.constant 0 : index
    %c0_30 = arith.constant 0 : index
    %25 = vector.load %arg11[%c0_29, %c0_30] : memref<8x128xf32, #tpu.memory_space<vmem>>, vector<2x128xf32>
    tpu.vector_store %arg11[%c0_29, %c0_30], %24 {strides = array<i32>} : memref<8x128xf32, #tpu.memory_space<vmem>>, vector<2x128xf32>,
    %cst_31 = arith.constant 0.000000e+00 : f32
    %26 = vector.broadcast %cst_31 : f32 to vector<5x128xf32>
    %c3 = arith.constant 3 : index
    %c0_32 = arith.constant 0 : index
    %27 = vector.load %arg11[%c3, %c0_32] : memref<8x128xf32, #tpu.memory_space<vmem>>, vector<5x128xf32>
    tpu.vector_store %arg11[%c3, %c0_32], %26 {strides = array<i32>} : memref<8x128xf32, #tpu.memory_space<vmem>>, vector<5x128xf32>,
    %cst_33 = arith.constant 0.000000e+00 : f32
    %28 = vector.broadcast %cst_33 : f32 to vector<2x128xf32>
    %c0_34 = arith.constant 0 : index
    %c0_35 = arith.constant 0 : index
    %29 = vector.load %arg12[%c0_34, %c0_35] : memref<8x128xf32, #tpu.memory_space<vmem>>, vector<2x128xf32>
    tpu.vector_store %arg12[%c0_34, %c0_35], %28 {strides = array<i32>} : memref<8x128xf32, #tpu.memory_space<vmem>>, vector<2x128xf32>,
    %cst_36 = arith.constant 0.000000e+00 : f32
    %30 = vector.broadcast %cst_36 : f32 to vector<5x128xf32>
    %c3_37 = arith.constant 3 : index
    %c0_38 = arith.constant 0 : index
    %31 = vector.load %arg12[%c3_37, %c0_38] : memref<8x128xf32, #tpu.memory_space<vmem>>, vector<5x128xf32>
    tpu.vector_store %arg12[%c3_37, %c0_38], %30 {strides = array<i32>} : memref<8x128xf32, #tpu.memory_space<vmem>>, vector<5x128xf32>,
    %32 = tpu.iota {dimensions = array<i32: 0>} : vector<16x128xi32>
    %33 = tpu.iota {dimensions = array<i32: 1>} : vector<16x128xi32>
    %34 = arith.cmpi eq, %32, %33 : vector<16x128xi32>
    %35 = arith.extui %34 : vector<16x128xi1> to vector<16x128xi32>
    %36 = arith.sitofp %35 : vector<16x128xi32> to vector<16x128xf32>
    %37 = arith.truncf %36 : vector<16x128xf32> to vector<16x128xbf16>
    %c0_39 = arith.constant 0 : index
    %c0_40 = arith.constant 0 : index
    %c0_41 = arith.constant 0 : index
    %38 = vector.load %arg1[%c0_39, %c0_40, %c0_41] : memref<1x64x16xbf16, #tpu.memory_space<vmem>>, vector<1x64x16xbf16>
    %39 = vector.shape_cast %38 : vector<1x64x16xbf16> to vector<64x16xbf16>
    %cst_42 = arith.constant dense<0.000000e+00> : vector<64x128xf32>
    %40 = tpu.matmul %39, %37, %cst_42 {dimension_numbers = #tpu.dot_dimension_numbers<[1], [0], [0], [1], [0, 0, 1, 1], [], []>} : vector<64x16xbf16>, vector<16x128xbf16>, vector<64x128xf32> -> vector<64x128xf32>
    %c2 = arith.constant 2 : index
    %c0_43 = arith.constant 0 : index
    %41 = vector.load %arg5[%c2, %c0_43] : memref<72x128xf32, #tpu.memory_space<vmem>>, vector<64x128xf32>
    tpu.vector_store %arg5[%c2, %c0_43], %40 {strides = array<i32>} : memref<72x128xf32, #tpu.memory_space<vmem>>, vector<64x128xf32>,
    %c0_44 = arith.constant 0 : index
    %c0_45 = arith.constant 0 : index
    %42 = tpu.strided_load %arg5[%c0_44, %c0_45] {strides = array<i32: 2, 1>} : memref<72x128xf32, #tpu.memory_space<vmem>>, vector<32x128xf32>
    %c1 = arith.constant 1 : index
    %c0_46 = arith.constant 0 : index
    %43 = tpu.strided_load %arg5[%c1, %c0_46] {strides = array<i32: 2, 1>} : memref<72x128xf32, #tpu.memory_space<vmem>>, vector<32x128xf32>
    %c2_47 = arith.constant 2 : index
    %c0_48 = arith.constant 0 : index
    %44 = tpu.strided_load %arg5[%c2_47, %c0_48] {strides = array<i32: 2, 1>} : memref<72x128xf32, #tpu.memory_space<vmem>>, vector<32x128xf32>
    %c3_49 = arith.constant 3 : index
    %c0_50 = arith.constant 0 : index
    %45 = tpu.strided_load %arg5[%c3_49, %c0_50] {strides = array<i32: 2, 1>} : memref<72x128xf32, #tpu.memory_space<vmem>>, vector<32x128xf32>
    %c4_51 = arith.constant 4 : index
    %c0_52 = arith.constant 0 : index
    %46 = tpu.strided_load %arg5[%c4_51, %c0_52] {strides = array<i32: 2, 1>} : memref<72x128xf32, #tpu.memory_space<vmem>>, vector<32x128xf32>
    %47 = tpu.concatenate %42, %43, %44, %45, %46 in 1 : vector<32x128xf32>, vector<32x128xf32>, vector<32x128xf32>, vector<32x128xf32>, vector<32x128xf32> -> vector<32x640xf32>
    %48 = arith.truncf %47 : vector<32x640xf32> to vector<32x640xbf16>
    %c0_53 = arith.constant 0 : index
    %c0_54 = arith.constant 0 : index
    %c0_55 = arith.constant 0 : index
    %49 = vector.load %arg2[%c0_53, %c0_54, %c0_55] : memref<8x640x128xbf16, #tpu.memory_space<vmem>>, vector<1x640x128xbf16>
    %50 = vector.shape_cast %49 : vector<1x640x128xbf16> to vector<640x128xbf16>
    %cst_56 = arith.constant dense<0.000000e+00> : vector<32x128xf32>
    %51 = tpu.matmul %48, %50, %cst_56 {dimension_numbers = #tpu.dot_dimension_numbers<[1], [0], [0], [1], [0, 0, 1, 1], [], []>} : vector<32x640xbf16>, vector<640x128xbf16>, vector<32x128xf32> -> vector<32x128xf32>
    %c0_57 = arith.constant 0 : index
    %c0_58 = arith.constant 0 : index
    %c0_59 = arith.constant 0 : index
    %52 = vector.load %arg3[%c0_57, %c0_58, %c0_59] : memref<8x3x128xf32, #tpu.memory_space<vmem>>, vector<1x3x128xf32>
    %53 = vector.shape_cast %52 : vector<1x3x128xf32> to vector<3x128xf32>
    %54 = vector.extract_strided_slice %53 {offsets = [0, 0], sizes = [1, 128], strides = [1, 1]} : vector<3x128xf32> to vector<1x128xf32>
    %55 = vector.broadcast %54 : vector<1x128xf32> to vector<32x128xf32>
    %56 = arith.addf %51, %55 : vector<32x128xf32>
    %cst_60 = arith.constant 0.000000e+00 : f32
    %57 = vector.broadcast %cst_60 : f32 to vector<32x128xf32>
    %58 = arith.cmpf oge, %56, %57 : vector<32x128xf32>
    %cst_61 = arith.constant 2.000000e-01 : f32
    %59 = vector.broadcast %cst_61 : f32 to vector<32x128xf32>
    %60 = arith.mulf %56, %59 : vector<32x128xf32>
    %61 = arith.select %58, %56, %60 : vector<32x128xi1>, vector<32x128xf32>
    %62 = vector.extract_strided_slice %53 {offsets = [1, 0], sizes = [1, 128], strides = [1, 1]} : vector<3x128xf32> to vector<1x128xf32>
    %63 = vector.broadcast %62 : vector<1x128xf32> to vector<32x128xf32>
    %64 = arith.mulf %61, %63 : vector<32x128xf32>
    %65 = vector.extract_strided_slice %53 {offsets = [2, 0], sizes = [1, 128], strides = [1, 1]} : vector<3x128xf32> to vector<1x128xf32>
    %66 = vector.broadcast %65 : vector<1x128xf32> to vector<32x128xf32>
    %67 = arith.addf %64, %66 : vector<32x128xf32>
    %c2_62 = arith.constant 2 : index
    %c0_63 = arith.constant 0 : index
    %68 = vector.load %arg6[%c2_62, %c0_63] : memref<40x128xf32, #tpu.memory_space<vmem>>, vector<32x128xf32>
    tpu.vector_store %arg6[%c2_62, %c0_63], %67 {strides = array<i32>} : memref<40x128xf32, #tpu.memory_space<vmem>>, vector<32x128xf32>,
    %c0_64 = arith.constant 0 : index
    %c0_65 = arith.constant 0 : index
    %69 = tpu.strided_load %arg6[%c0_64, %c0_65] {strides = array<i32: 2, 1>} : memref<40x128xf32, #tpu.memory_space<vmem>>, vector<16x128xf32>
    %c1_66 = arith.constant 1 : index
    %c0_67 = arith.constant 0 : index
    %70 = tpu.strided_load %arg6[%c1_66, %c0_67] {strides = array<i32: 2, 1>} : memref<40x128xf32, #tpu.memory_space<vmem>>, vector<16x128xf32>
    %c2_68 = arith.constant 2 : index
    %c0_69 = arith.constant 0 : index
    %71 = tpu.strided_load %arg6[%c2_68, %c0_69] {strides = array<i32: 2, 1>} : memref<40x128xf32, #tpu.memory_space<vmem>>, vector<16x128xf32>
    %c3_70 = arith.constant 3 : index
    %c0_71 = arith.constant 0 : index
    %72 = tpu.strided_load %arg6[%c3_70, %c0_71] {strides = array<i32: 2, 1>} : memref<40x128xf32, #tpu.memory_space<vmem>>, vector<16x128xf32>
    %c4_72 = arith.constant 4 : index
    %c0_73 = arith.constant 0 : index
    %73 = tpu.strided_load %arg6[%c4_72, %c0_73] {strides = array<i32: 2, 1>} : memref<40x128xf32, #tpu.memory_space<vmem>>, vector<16x128xf32>
    %74 = tpu.concatenate %69, %70, %71, %72, %73 in 1 : vector<16x128xf32>, vector<16x128xf32>, vector<16x128xf32>, vector<16x128xf32>, vector<16x128xf32> -> vector<16x640xf32>
    %75 = arith.truncf %74 : vector<16x640xf32> to vector<16x640xbf16>
    %c1_74 = arith.constant 1 : index
    %c0_75 = arith.constant 0 : index
    %c0_76 = arith.constant 0 : index
    %76 = vector.load %arg2[%c1_74, %c0_75, %c0_76] : memref<8x640x128xbf16, #tpu.memory_space<vmem>>, vector<1x640x128xbf16>
    %77 = vector.shape_cast %76 : vector<1x640x128xbf16> to vector<640x128xbf16>
    %cst_77 = arith.constant dense<0.000000e+00> : vector<16x128xf32>
    %78 = tpu.matmul %75, %77, %cst_77 {dimension_numbers = #tpu.dot_dimension_numbers<[1], [0], [0], [1], [0, 0, 1, 1], [], []>} : vector<16x640xbf16>, vector<640x128xbf16>, vector<16x128xf32> -> vector<16x128xf32>
    %c1_78 = arith.constant 1 : index
    %c0_79 = arith.constant 0 : index
    %c0_80 = arith.constant 0 : index
    %79 = vector.load %arg3[%c1_78, %c0_79, %c0_80] : memref<8x3x128xf32, #tpu.memory_space<vmem>>, vector<1x3x128xf32>
    %80 = vector.shape_cast %79 : vector<1x3x128xf32> to vector<3x128xf32>
    %81 = vector.extract_strided_slice %80 {offsets = [0, 0], sizes = [1, 128], strides = [1, 1]} : vector<3x128xf32> to vector<1x128xf32>
    %82 = vector.broadcast %81 : vector<1x128xf32> to vector<16x128xf32>
    %83 = arith.addf %78, %82 : vector<16x128xf32>
    %cst_81 = arith.constant 0.000000e+00 : f32
    %84 = vector.broadcast %cst_81 : f32 to vector<16x128xf32>
    %85 = arith.cmpf oge, %83, %84 : vector<16x128xf32>
    %cst_82 = arith.constant 2.000000e-01 : f32
    %86 = vector.broadcast %cst_82 : f32 to vector<16x128xf32>
    %87 = arith.mulf %83, %86 : vector<16x128xf32>
    %88 = arith.select %85, %83, %87 : vector<16x128xi1>, vector<16x128xf32>
    %89 = vector.extract_strided_slice %80 {offsets = [1, 0], sizes = [1, 128], strides = [1, 1]} : vector<3x128xf32> to vector<1x128xf32>
    %90 = vector.broadcast %89 : vector<1x128xf32> to vector<16x128xf32>
    %91 = arith.mulf %88, %90 : vector<16x128xf32>
    %92 = vector.extract_strided_slice %80 {offsets = [2, 0], sizes = [1, 128], strides = [1, 1]} : vector<3x128xf32> to vector<1x128xf32>
    %93 = vector.broadcast %92 : vector<1x128xf32> to vector<16x128xf32>
    %94 = arith.addf %91, %93 : vector<16x128xf32>
    %c2_83 = arith.constant 2 : index
    %c0_84 = arith.constant 0 : index
    %95 = vector.load %arg7[%c2_83, %c0_84] : memref<24x128xf32, #tpu.memory_space<vmem>>, vector<16x128xf32>
    tpu.vector_store %arg7[%c2_83, %c0_84], %94 {strides = array<i32>} : memref<24x128xf32, #tpu.memory_space<vmem>>, vector<16x128xf32>,
    %c0_85 = arith.constant 0 : index
    %c0_86 = arith.constant 0 : index
    %96 = tpu.strided_load %arg7[%c0_85, %c0_86] {strides = array<i32: 2, 1>} : memref<24x128xf32, #tpu.memory_space<vmem>>, vector<8x128xf32>
    %c1_87 = arith.constant 1 : index
    %c0_88 = arith.constant 0 : index
    %97 = tpu.strided_load %arg7[%c1_87, %c0_88] {strides = array<i32: 2, 1>} : memref<24x128xf32, #tpu.memory_space<vmem>>, vector<8x128xf32>
    %c2_89 = arith.constant 2 : index
    %c0_90 = arith.constant 0 : index
    %98 = tpu.strided_load %arg7[%c2_89, %c0_90] {strides = array<i32: 2, 1>} : memref<24x128xf32, #tpu.memory_space<vmem>>, vector<8x128xf32>
    %c3_91 = arith.constant 3 : index
    %c0_92 = arith.constant 0 : index
    %99 = tpu.strided_load %arg7[%c3_91, %c0_92] {strides = array<i32: 2, 1>} : memref<24x128xf32, #tpu.memory_space<vmem>>, vector<8x128xf32>
    %c4_93 = arith.constant 4 : index
    %c0_94 = arith.constant 0 : index
    %100 = tpu.strided_load %arg7[%c4_93, %c0_94] {strides = array<i32: 2, 1>} : memref<24x128xf32, #tpu.memory_space<vmem>>, vector<8x128xf32>
    %101 = tpu.concatenate %96, %97, %98, %99, %100 in 1 : vector<8x128xf32>, vector<8x128xf32>, vector<8x128xf32>, vector<8x128xf32>, vector<8x128xf32> -> vector<8x640xf32>
    %102 = arith.truncf %101 : vector<8x640xf32> to vector<8x640xbf16>
    %c2_95 = arith.constant 2 : index
    %c0_96 = arith.constant 0 : index
    %c0_97 = arith.constant 0 : index
    %103 = vector.load %arg2[%c2_95, %c0_96, %c0_97] : memref<8x640x128xbf16, #tpu.memory_space<vmem>>, vector<1x640x128xbf16>
    %104 = vector.shape_cast %103 : vector<1x640x128xbf16> to vector<640x128xbf16>
    %cst_98 = arith.constant dense<0.000000e+00> : vector<8x128xf32>
    %105 = tpu.matmul %102, %104, %cst_98 {dimension_numbers = #tpu.dot_dimension_numbers<[1], [0], [0], [1], [0, 0, 1, 1], [], []>} : vector<8x640xbf16>, vector<640x128xbf16>, vector<8x128xf32> -> vector<8x128xf32>
    %c2_99 = arith.constant 2 : index
    %c0_100 = arith.constant 0 : index
    %c0_101 = arith.constant 0 : index
    %106 = vector.load %arg3[%c2_99, %c0_100, %c0_101] : memref<8x3x128xf32, #tpu.memory_space<vmem>>, vector<1x3x128xf32>
    %107 = vector.shape_cast %106 : vector<1x3x128xf32> to vector<3x128xf32>
    %108 = vector.extract_strided_slice %107 {offsets = [0, 0], sizes = [1, 128], strides = [1, 1]} : vector<3x128xf32> to vector<1x128xf32>
    %109 = vector.broadcast %108 : vector<1x128xf32> to vector<8x128xf32>
    %110 = arith.addf %105, %109 : vector<8x128xf32>
    %cst_102 = arith.constant 0.000000e+00 : f32
    %111 = vector.broadcast %cst_102 : f32 to vector<8x128xf32>
    %112 = arith.cmpf oge, %110, %111 : vector<8x128xf32>
    %cst_103 = arith.constant 2.000000e-01 : f32
    %113 = vector.broadcast %cst_103 : f32 to vector<8x128xf32>
    %114 = arith.mulf %110, %113 : vector<8x128xf32>
    %115 = arith.select %112, %110, %114 : vector<8x128xi1>, vector<8x128xf32>
    %116 = vector.extract_strided_slice %107 {offsets = [1, 0], sizes = [1, 128], strides = [1, 1]} : vector<3x128xf32> to vector<1x128xf32>
    %117 = vector.broadcast %116 : vector<1x128xf32> to vector<8x128xf32>
    %118 = arith.mulf %115, %117 : vector<8x128xf32>
    %119 = vector.extract_strided_slice %107 {offsets = [2, 0], sizes = [1, 128], strides = [1, 1]} : vector<3x128xf32> to vector<1x128xf32>
    %120 = vector.broadcast %119 : vector<1x128xf32> to vector<8x128xf32>
    %121 = arith.addf %118, %120 : vector<8x128xf32>
    %c2_104 = arith.constant 2 : index
    %c0_105 = arith.constant 0 : index
    %122 = vector.load %arg8[%c2_104, %c0_105] : memref<16x128xf32, #tpu.memory_space<vmem>>, vector<8x128xf32>
    tpu.vector_store %arg8[%c2_104, %c0_105], %121 {strides = array<i32>} : memref<16x128xf32, #tpu.memory_space<vmem>>, vector<8x128xf32>,
    %c0_106 = arith.constant 0 : index
    %c0_107 = arith.constant 0 : index
    %123 = tpu.strided_load %arg8[%c0_106, %c0_107] {strides = array<i32: 2, 1>} : memref<16x128xf32, #tpu.memory_space<vmem>>, vector<4x128xf32>
    %c1_108 = arith.constant 1 : index
    %c0_109 = arith.constant 0 : index
    %124 = tpu.strided_load %arg8[%c1_108, %c0_109] {strides = array<i32: 2, 1>} : memref<16x128xf32, #tpu.memory_space<vmem>>, vector<4x128xf32>
    %c2_110 = arith.constant 2 : index
    %c0_111 = arith.constant 0 : index
    %125 = tpu.strided_load %arg8[%c2_110, %c0_111] {strides = array<i32: 2, 1>} : memref<16x128xf32, #tpu.memory_space<vmem>>, vector<4x128xf32>
    %c3_112 = arith.constant 3 : index
    %c0_113 = arith.constant 0 : index
    %126 = tpu.strided_load %arg8[%c3_112, %c0_113] {strides = array<i32: 2, 1>} : memref<16x128xf32, #tpu.memory_space<vmem>>, vector<4x128xf32>
    %c4_114 = arith.constant 4 : index
    %c0_115 = arith.constant 0 : index
    %127 = tpu.strided_load %arg8[%c4_114, %c0_115] {strides = array<i32: 2, 1>} : memref<16x128xf32, #tpu.memory_space<vmem>>, vector<4x128xf32>
    %128 = tpu.concatenate %123, %124, %125, %126, %127 in 1 : vector<4x128xf32>, vector<4x128xf32>, vector<4x128xf32>, vector<4x128xf32>, vector<4x128xf32> -> vector<4x640xf32>
    %129 = arith.truncf %128 : vector<4x640xf32> to vector<4x640xbf16>
    %c3_116 = arith.constant 3 : index
    %c0_117 = arith.constant 0 : index
    %c0_118 = arith.constant 0 : index
    %130 = vector.load %arg2[%c3_116, %c0_117, %c0_118] : memref<8x640x128xbf16, #tpu.memory_space<vmem>>, vector<1x640x128xbf16>
    %131 = vector.shape_cast %130 : vector<1x640x128xbf16> to vector<640x128xbf16>
    %cst_119 = arith.constant dense<0.000000e+00> : vector<4x128xf32>
    %132 = tpu.matmul %129, %131, %cst_119 {dimension_numbers = #tpu.dot_dimension_numbers<[1], [0], [0], [1], [0, 0, 1, 1], [], []>} : vector<4x640xbf16>, vector<640x128xbf16>, vector<4x128xf32> -> vector<4x128xf32>
    %c3_120 = arith.constant 3 : index
    %c0_121 = arith.constant 0 : index
    %c0_122 = arith.constant 0 : index
    %133 = vector.load %arg3[%c3_120, %c0_121, %c0_122] : memref<8x3x128xf32, #tpu.memory_space<vmem>>, vector<1x3x128xf32>
    %134 = vector.shape_cast %133 : vector<1x3x128xf32> to vector<3x128xf32>
    %135 = vector.extract_strided_slice %134 {offsets = [0, 0], sizes = [1, 128], strides = [1, 1]} : vector<3x128xf32> to vector<1x128xf32>
    %136 = vector.broadcast %135 : vector<1x128xf32> to vector<4x128xf32>
    %137 = arith.addf %132, %136 : vector<4x128xf32>
    %cst_123 = arith.constant 0.000000e+00 : f32
    %138 = vector.broadcast %cst_123 : f32 to vector<4x128xf32>
    %139 = arith.cmpf oge, %137, %138 : vector<4x128xf32>
    %cst_124 = arith.constant 2.000000e-01 : f32
    %140 = vector.broadcast %cst_124 : f32 to vector<4x128xf32>
    %141 = arith.mulf %137, %140 : vector<4x128xf32>
    %142 = arith.select %139, %137, %141 : vector<4x128xi1>, vector<4x128xf32>
    %143 = vector.extract_strided_slice %134 {offsets = [1, 0], sizes = [1, 128], strides = [1, 1]} : vector<3x128xf32> to vector<1x128xf32>
    %144 = vector.broadcast %143 : vector<1x128xf32> to vector<4x128xf32>
    %145 = arith.mulf %142, %144 : vector<4x128xf32>
    %146 = vector.extract_strided_slice %134 {offsets = [2, 0], sizes = [1, 128], strides = [1, 1]} : vector<3x128xf32> to vector<1x128xf32>
    %147 = vector.broadcast %146 : vector<1x128xf32> to vector<4x128xf32>
    %148 = arith.addf %145, %147 : vector<4x128xf32>
    %c2_125 = arith.constant 2 : index
    %c0_126 = arith.constant 0 : index
    %149 = vector.load %arg9[%c2_125, %c0_126] : memref<8x128xf32, #tpu.memory_space<vmem>>, vector<4x128xf32>
    tpu.vector_store %arg9[%c2_125, %c0_126], %148 {strides = array<i32>} : memref<8x128xf32, #tpu.memory_space<vmem>>, vector<4x128xf32>,
    %c0_127 = arith.constant 0 : index
    %c0_128 = arith.constant 0 : index
    %150 = tpu.strided_load %arg9[%c0_127, %c0_128] {strides = array<i32: 2, 1>} : memref<8x128xf32, #tpu.memory_space<vmem>>, vector<2x128xf32>
    %c1_129 = arith.constant 1 : index
    %c0_130 = arith.constant 0 : index
    %151 = tpu.strided_load %arg9[%c1_129, %c0_130] {strides = array<i32: 2, 1>} : memref<8x128xf32, #tpu.memory_space<vmem>>, vector<2x128xf32>
    %c2_131 = arith.constant 2 : index
    %c0_132 = arith.constant 0 : index
    %152 = tpu.strided_load %arg9[%c2_131, %c0_132] {strides = array<i32: 2, 1>} : memref<8x128xf32, #tpu.memory_space<vmem>>, vector<2x128xf32>
    %c3_133 = arith.constant 3 : index
    %c0_134 = arith.constant 0 : index
    %153 = tpu.strided_load %arg9[%c3_133, %c0_134] {strides = array<i32: 2, 1>} : memref<8x128xf32, #tpu.memory_space<vmem>>, vector<2x128xf32>
    %c4_135 = arith.constant 4 : index
    %c0_136 = arith.constant 0 : index
    %154 = tpu.strided_load %arg9[%c4_135, %c0_136] {strides = array<i32: 2, 1>} : memref<8x128xf32, #tpu.memory_space<vmem>>, vector<2x128xf32>
    %155 = tpu.concatenate %150, %151, %152, %153, %154 in 1 : vector<2x128xf32>, vector<2x128xf32>, vector<2x128xf32>, vector<2x128xf32>, vector<2x128xf32> -> vector<2x640xf32>
    %156 = arith.truncf %155 : vector<2x640xf32> to vector<2x640xbf16>
    %c4_137 = arith.constant 4 : index
    %c0_138 = arith.constant 0 : index
    %c0_139 = arith.constant 0 : index
    %157 = vector.load %arg2[%c4_137, %c0_138, %c0_139] : memref<8x640x128xbf16, #tpu.memory_space<vmem>>, vector<1x640x128xbf16>
    %158 = vector.shape_cast %157 : vector<1x640x128xbf16> to vector<640x128xbf16>
    %cst_140 = arith.constant dense<0.000000e+00> : vector<2x128xf32>
    %159 = tpu.matmul %156, %158, %cst_140 {dimension_numbers = #tpu.dot_dimension_numbers<[1], [0], [0], [1], [0, 0, 1, 1], [], []>} : vector<2x640xbf16>, vector<640x128xbf16>, vector<2x128xf32> -> vector<2x128xf32>
    %c4_141 = arith.constant 4 : index
    %c0_142 = arith.constant 0 : index
    %c0_143 = arith.constant 0 : index
    %160 = vector.load %arg3[%c4_141, %c0_142, %c0_143] : memref<8x3x128xf32, #tpu.memory_space<vmem>>, vector<1x3x128xf32>
    %161 = vector.shape_cast %160 : vector<1x3x128xf32> to vector<3x128xf32>
    %162 = vector.extract_strided_slice %161 {offsets = [0, 0], sizes = [1, 128], strides = [1, 1]} : vector<3x128xf32> to vector<1x128xf32>
    %163 = vector.broadcast %162 : vector<1x128xf32> to vector<2x128xf32>
    %164 = arith.addf %159, %163 : vector<2x128xf32>
    %cst_144 = arith.constant 0.000000e+00 : f32
    %165 = vector.broadcast %cst_144 : f32 to vector<2x128xf32>
    %166 = arith.cmpf oge, %164, %165 : vector<2x128xf32>
    %cst_145 = arith.constant 2.000000e-01 : f32
    %167 = vector.broadcast %cst_145 : f32 to vector<2x128xf32>
    %168 = arith.mulf %164, %167 : vector<2x128xf32>
    %169 = arith.select %166, %164, %168 : vector<2x128xi1>, vector<2x128xf32>
    %170 = vector.extract_strided_slice %161 {offsets = [1, 0], sizes = [1, 128], strides = [1, 1]} : vector<3x128xf32> to vector<1x128xf32>
    %171 = vector.broadcast %170 : vector<1x128xf32> to vector<2x128xf32>
    %172 = arith.mulf %169, %171 : vector<2x128xf32>
    %173 = vector.extract_strided_slice %161 {offsets = [2, 0], sizes = [1, 128], strides = [1, 1]} : vector<3x128xf32> to vector<1x128xf32>
    %174 = vector.broadcast %173 : vector<1x128xf32> to vector<2x128xf32>
    %175 = arith.addf %172, %174 : vector<2x128xf32>
    %c2_146 = arith.constant 2 : index
    %c0_147 = arith.constant 0 : index
    %176 = vector.load %arg10[%c2_146, %c0_147] : memref<8x128xf32, #tpu.memory_space<vmem>>, vector<2x128xf32>
    tpu.vector_store %arg10[%c2_146, %c0_147], %175 {strides = array<i32>} : memref<8x128xf32, #tpu.memory_space<vmem>>, vector<2x128xf32>,
    %c0_148 = arith.constant 0 : index
    %c0_149 = arith.constant 0 : index
    %177 = vector.load %arg10[%c0_148, %c0_149] : memref<8x128xf32, #tpu.memory_space<vmem>>, vector<1x128xf32>
    %c1_150 = arith.constant 1 : index
    %c0_151 = arith.constant 0 : index
    %178 = vector.load %arg10[%c1_150, %c0_151] : memref<8x128xf32, #tpu.memory_space<vmem>>, vector<1x128xf32>
    %c2_152 = arith.constant 2 : index
    %c0_153 = arith.constant 0 : index
    %179 = vector.load %arg10[%c2_152, %c0_153] : memref<8x128xf32, #tpu.memory_space<vmem>>, vector<1x128xf32>
    %c3_154 = arith.constant 3 : index
    %c0_155 = arith.constant 0 : index
    %180 = vector.load %arg10[%c3_154, %c0_155] : memref<8x128xf32, #tpu.memory_space<vmem>>, vector<1x128xf32>
    %c4_156 = arith.constant 4 : index
    %c0_157 = arith.constant 0 : index
    %181 = vector.load %arg10[%c4_156, %c0_157] : memref<8x128xf32, #tpu.memory_space<vmem>>, vector<1x128xf32>
    %182 = tpu.concatenate %177, %178, %179, %180, %181 in 1 : vector<1x128xf32>, vector<1x128xf32>, vector<1x128xf32>, vector<1x128xf32>, vector<1x128xf32> -> vector<1x640xf32>
    %183 = arith.truncf %182 : vector<1x640xf32> to vector<1x640xbf16>
    %c5 = arith.constant 5 : index
    %c0_158 = arith.constant 0 : index
    %c0_159 = arith.constant 0 : index
    %184 = vector.load %arg2[%c5, %c0_158, %c0_159] : memref<8x640x128xbf16, #tpu.memory_space<vmem>>, vector<1x640x128xbf16>
    %185 = vector.shape_cast %184 : vector<1x640x128xbf16> to vector<640x128xbf16>
    %cst_160 = arith.constant dense<0.000000e+00> : vector<1x128xf32>
    %186 = tpu.matmul %183, %185, %cst_160 {dimension_numbers = #tpu.dot_dimension_numbers<[1], [0], [0], [1], [0, 0, 1, 1], [], []>} : vector<1x640xbf16>, vector<640x128xbf16>, vector<1x128xf32> -> vector<1x128xf32>
    %c5_161 = arith.constant 5 : index
    %c0_162 = arith.constant 0 : index
    %c0_163 = arith.constant 0 : index
    %187 = vector.load %arg3[%c5_161, %c0_162, %c0_163] : memref<8x3x128xf32, #tpu.memory_space<vmem>>, vector<1x3x128xf32>
    %188 = vector.shape_cast %187 : vector<1x3x128xf32> to vector<3x128xf32>
    %189 = vector.extract_strided_slice %188 {offsets = [0, 0], sizes = [1, 128], strides = [1, 1]} : vector<3x128xf32> to vector<1x128xf32>
    %190 = arith.addf %186, %189 : vector<1x128xf32>
    %cst_164 = arith.constant 0.000000e+00 : f32
    %191 = vector.broadcast %cst_164 : f32 to vector<1x128xf32>
    %192 = arith.cmpf oge, %190, %191 : vector<1x128xf32>
    %cst_165 = arith.constant 2.000000e-01 : f32
    %193 = vector.broadcast %cst_165 : f32 to vector<1x128xf32>
    %194 = arith.mulf %190, %193 : vector<1x128xf32>
    %195 = arith.select %192, %190, %194 : vector<1x128xi1>, vector<1x128xf32>
    %196 = vector.extract_strided_slice %188 {offsets = [1, 0], sizes = [1, 128], strides = [1, 1]} : vector<3x128xf32> to vector<1x128xf32>
    %197 = arith.mulf %195, %196 : vector<1x128xf32>
    %198 = vector.extract_strided_slice %188 {offsets = [2, 0], sizes = [1, 128], strides = [1, 1]} : vector<3x128xf32> to vector<1x128xf32>
    %199 = arith.addf %197, %198 : vector<1x128xf32>
    %c2_166 = arith.constant 2 : index
    %c0_167 = arith.constant 0 : index
    %200 = vector.load %arg11[%c2_166, %c0_167] : memref<8x128xf32, #tpu.memory_space<vmem>>, vector<1x128xf32>
    tpu.vector_store %arg11[%c2_166, %c0_167], %199 {strides = array<i32>} : memref<8x128xf32, #tpu.memory_space<vmem>>, vector<1x128xf32>,
    %c0_168 = arith.constant 0 : index
    %c0_169 = arith.constant 0 : index
    %201 = vector.load %arg11[%c0_168, %c0_169] : memref<8x128xf32, #tpu.memory_space<vmem>>, vector<1x128xf32>
    %c1_170 = arith.constant 1 : index
    %c0_171 = arith.constant 0 : index
    %202 = vector.load %arg11[%c1_170, %c0_171] : memref<8x128xf32, #tpu.memory_space<vmem>>, vector<1x128xf32>
    %c2_172 = arith.constant 2 : index
    %c0_173 = arith.constant 0 : index
    %203 = vector.load %arg11[%c2_172, %c0_173] : memref<8x128xf32, #tpu.memory_space<vmem>>, vector<1x128xf32>
    %c3_174 = arith.constant 3 : index
    %c0_175 = arith.constant 0 : index
    %204 = vector.load %arg11[%c3_174, %c0_175] : memref<8x128xf32, #tpu.memory_space<vmem>>, vector<1x128xf32>
    %c4_176 = arith.constant 4 : index
    %c0_177 = arith.constant 0 : index
    %205 = vector.load %arg11[%c4_176, %c0_177] : memref<8x128xf32, #tpu.memory_space<vmem>>, vector<1x128xf32>
    %206 = tpu.concatenate %201, %202, %203, %204, %205 in 1 : vector<1x128xf32>, vector<1x128xf32>, vector<1x128xf32>, vector<1x128xf32>, vector<1x128xf32> -> vector<1x640xf32>
    %207 = arith.truncf %206 : vector<1x640xf32> to vector<1x640xbf16>
    %c6_178 = arith.constant 6 : index
    %c0_179 = arith.constant 0 : index
    %c0_180 = arith.constant 0 : index
    %208 = vector.load %arg2[%c6_178, %c0_179, %c0_180] : memref<8x640x128xbf16, #tpu.memory_space<vmem>>, vector<1x640x128xbf16>
    %209 = vector.shape_cast %208 : vector<1x640x128xbf16> to vector<640x128xbf16>
    %cst_181 = arith.constant dense<0.000000e+00> : vector<1x128xf32>
    %210 = tpu.matmul %207, %209, %cst_181 {dimension_numbers = #tpu.dot_dimension_numbers<[1], [0], [0], [1], [0, 0, 1, 1], [], []>} : vector<1x640xbf16>, vector<640x128xbf16>, vector<1x128xf32> -> vector<1x128xf32>
    %c6_182 = arith.constant 6 : index
    %c0_183 = arith.constant 0 : index
    %c0_184 = arith.constant 0 : index
    %211 = vector.load %arg3[%c6_182, %c0_183, %c0_184] : memref<8x3x128xf32, #tpu.memory_space<vmem>>, vector<1x3x128xf32>
    %212 = vector.shape_cast %211 : vector<1x3x128xf32> to vector<3x128xf32>
    %213 = vector.extract_strided_slice %212 {offsets = [0, 0], sizes = [1, 128], strides = [1, 1]} : vector<3x128xf32> to vector<1x128xf32>
    %214 = arith.addf %210, %213 : vector<1x128xf32>
    %cst_185 = arith.constant 0.000000e+00 : f32
    %215 = vector.broadcast %cst_185 : f32 to vector<1x128xf32>
    %216 = arith.cmpf oge, %214, %215 : vector<1x128xf32>
    %cst_186 = arith.constant 2.000000e-01 : f32
    %217 = vector.broadcast %cst_186 : f32 to vector<1x128xf32>
    %218 = arith.mulf %214, %217 : vector<1x128xf32>
    %219 = arith.select %216, %214, %218 : vector<1x128xi1>, vector<1x128xf32>
    %220 = vector.extract_strided_slice %212 {offsets = [1, 0], sizes = [1, 128], strides = [1, 1]} : vector<3x128xf32> to vector<1x128xf32>
    %221 = arith.mulf %219, %220 : vector<1x128xf32>
    %222 = vector.extract_strided_slice %212 {offsets = [2, 0], sizes = [1, 128], strides = [1, 1]} : vector<3x128xf32> to vector<1x128xf32>
    %223 = arith.addf %221, %222 : vector<1x128xf32>
    %c2_187 = arith.constant 2 : index
    %c0_188 = arith.constant 0 : index
    %224 = vector.load %arg12[%c2_187, %c0_188] : memref<8x128xf32, #tpu.memory_space<vmem>>, vector<1x128xf32>
    tpu.vector_store %arg12[%c2_187, %c0_188], %223 {strides = array<i32>} : memref<8x128xf32, #tpu.memory_space<vmem>>, vector<1x128xf32>,
    %c0_189 = arith.constant 0 : index
    %c0_190 = arith.constant 0 : index
    %225 = vector.load %arg12[%c0_189, %c0_190] : memref<8x128xf32, #tpu.memory_space<vmem>>, vector<1x128xf32>
    %c1_191 = arith.constant 1 : index
    %c0_192 = arith.constant 0 : index
    %226 = vector.load %arg12[%c1_191, %c0_192] : memref<8x128xf32, #tpu.memory_space<vmem>>, vector<1x128xf32>
    %c2_193 = arith.constant 2 : index
    %c0_194 = arith.constant 0 : index
    %227 = vector.load %arg12[%c2_193, %c0_194] : memref<8x128xf32, #tpu.memory_space<vmem>>, vector<1x128xf32>
    %c3_195 = arith.constant 3 : index
    %c0_196 = arith.constant 0 : index
    %228 = vector.load %arg12[%c3_195, %c0_196] : memref<8x128xf32, #tpu.memory_space<vmem>>, vector<1x128xf32>
    %c4_197 = arith.constant 4 : index
    %c0_198 = arith.constant 0 : index
    %229 = vector.load %arg12[%c4_197, %c0_198] : memref<8x128xf32, #tpu.memory_space<vmem>>, vector<1x128xf32>
    %230 = tpu.concatenate %225, %226, %227, %228, %229 in 1 : vector<1x128xf32>, vector<1x128xf32>, vector<1x128xf32>, vector<1x128xf32>, vector<1x128xf32> -> vector<1x640xf32>
    %231 = arith.truncf %230 : vector<1x640xf32> to vector<1x640xbf16>
    %c7 = arith.constant 7 : index
    %c0_199 = arith.constant 0 : index
    %c0_200 = arith.constant 0 : index
    %232 = vector.load %arg2[%c7, %c0_199, %c0_200] : memref<8x640x128xbf16, #tpu.memory_space<vmem>>, vector<1x640x128xbf16>
    %233 = vector.shape_cast %232 : vector<1x640x128xbf16> to vector<640x128xbf16>
    %cst_201 = arith.constant dense<0.000000e+00> : vector<1x128xf32>
    %234 = tpu.matmul %231, %233, %cst_201 {dimension_numbers = #tpu.dot_dimension_numbers<[1], [0], [0], [1], [0, 0, 1, 1], [], []>} : vector<1x640xbf16>, vector<640x128xbf16>, vector<1x128xf32> -> vector<1x128xf32>
    %c7_202 = arith.constant 7 : index
    %c0_203 = arith.constant 0 : index
    %c0_204 = arith.constant 0 : index
    %235 = vector.load %arg3[%c7_202, %c0_203, %c0_204] : memref<8x3x128xf32, #tpu.memory_space<vmem>>, vector<1x3x128xf32>
    %236 = vector.shape_cast %235 : vector<1x3x128xf32> to vector<3x128xf32>
    %237 = vector.extract_strided_slice %236 {offsets = [0, 0], sizes = [1, 128], strides = [1, 1]} : vector<3x128xf32> to vector<1x128xf32>
    %238 = arith.addf %234, %237 : vector<1x128xf32>
    %c0_205 = arith.constant 0 : index
    %c0_206 = arith.constant 0 : index
    %c0_207 = arith.constant 0 : index
    %239 = vector.load %arg4[%c0_205, %c0_206, %c0_207] : memref<1x1x128xf32, #tpu.memory_space<vmem>>, vector<1x1x128xf32>
    %240 = vector.shape_cast %239 : vector<1x1x128xf32> to vector<1x128xf32>
    %241 = vector.shape_cast %238 : vector<1x128xf32> to vector<1x1x128xf32>
    tpu.vector_store %arg4[%c0_205, %c0_206, %c0_207], %241 {strides = array<i32>} : memref<1x1x128xf32, #tpu.memory_space<vmem>>, vector<1x1x128xf32>,
    return
  }
  func.func @transform_0(%arg0: i32) -> (i32, i32, i32) {
    %c0_i32 = arith.constant 0 : i32
    %c0_i32_0 = arith.constant 0 : i32
    %c0_i32_1 = arith.constant 0 : i32
    return %arg0, %c0_i32, %c0_i32_0 : i32, i32, i32
  }
  func.func @transform_1(%arg0: i32) -> (i32, i32, i32) {
    %c0_i32 = arith.constant 0 : i32
    %c0_i32_0 = arith.constant 0 : i32
    %c0_i32_1 = arith.constant 0 : i32
    %c0_i32_2 = arith.constant 0 : i32
    return %c0_i32, %c0_i32_0, %c0_i32_1 : i32, i32, i32
  }
  func.func @transform_2(%arg0: i32) -> (i32, i32, i32) {
    %c0_i32 = arith.constant 0 : i32
    %c0_i32_0 = arith.constant 0 : i32
    %c0_i32_1 = arith.constant 0 : i32
    %c0_i32_2 = arith.constant 0 : i32
    return %c0_i32, %c0_i32_0, %c0_i32_1 : i32, i32, i32
  }
  func.func @transform_3(%arg0: i32) -> (i32, i32, i32) {
    %c0_i32 = arith.constant 0 : i32
    %c0_i32_0 = arith.constant 0 : i32
    %c0_i32_1 = arith.constant 0 : i32
    return %arg0, %c0_i32, %c0_i32_0 : i32, i32, i32
  }
}

</mosaic_0001>

<bundles_post_ra>
// kernel: discriminator_forward.1
= control target key start
LH: loop header
LB: loop body
LE: loop exit
PB: predicated region body
PF: predicated region fallthrough
CT: control target
= control target key end

     0   :  { %8 = vsyncpa [#allocation11], 0  ;;  %s5615_s12 = smov 0   ;;  %s5826_s0 = inlined_call_operand.vmem [shape: bf16[2,64,16], index: 0, kind: input, shape index: {}]   ;;  %s5827_s1 = inlined_call_operand.hbm [shape: bf16[8,640,128], index: 1, kind: input, shape index: {}]   ;;  %s5828_s2 = inlined_call_operand.vmem [shape: f32[8,3,128], index: 2, kind: input, shape index: {}]   ;;  %s5829_s3 = inlined_call_operand.vmem [shape: f32[2,1,128], index: 3, kind: output, shape index: {}]  }
   0x1 LB: > { %s5621_s13 = sadd.s32 4294967295, %s5587_s12   ;;  %p4240_p0 = scmp.ge.s32.totalorder %s5587_s12, 1  ;;  %s5587_s12 = sphi %s5615_s12, %s14_s12  }
   0x2   : > { %p113_p1 = scmp.lt.s32.totalorder %s5587_s12, 3  ;;  %s5589_s14 = smov [#allocation10]  }
   0x3   : > { %s125_s15 = sshll.u32 %s5589_s14, 4  ;;  %p5830_p3 = scmp.eq.s32.totalorder %s5621_s13, 0  ;;  %s126_s15 = int_to_ptr.vmem [resolvable:$true] %s125_s15 }
   0x4   : > { %p5625_p2 = pnand %p4240_p0, %p113_p1  ;;  %s5549_s20 = scalar_lea.hbm %s5827_s1, 40960 }
   0x5   : > { %p5550_p6 = scmp.ne.s32.totalorder %s5827_s1, %s5549_s20  ;;  %p5556_p10 = scmp.lt.u32.totalorder %s5549_s20, %s5827_s1 }
   0x6   : > { %s5832_s16 = scalar_select %p5625_p2, 1, 0 }
   0x7   : > { %p5205_p4 = pneg %p5625_p2 }
   0x9   : > { %p5634_p5 = pnand %p5830_p3, %p5205_p4 }
   0xb   : > { %p5551_p7 = pneg %p5634_p5 }
   0xd   : > { %p5552_p8 = pnand %p5551_p7, %p5550_p6 }
   0xf   : > { %p5553_p9 = pneg %p5552_p8 }
  0x11   : > { %p5558_p11 = pnand %p5556_p10, %p5553_p9 }
  0x13   : > { %5561 = shalt.err (!%p5558_p11)
}
  0x14   : > { %s5562_s25 = scalar_lea.vmem %s126_s15, 40960  ;;  %p5570_p1 = scmp.lt.s32.totalorder %s126_s15, %s126_s15 }
  0x15   : > { %p5563_p12 = scmp.ne.s32.totalorder %s126_s15, %s5562_s25  ;;  %p5571_p4 = scmp.lt.s32.totalorder %s5562_s25, %s5562_s25 }
  0x17   : > { %p5565_p13 = pnand %p5563_p12, %p5551_p7  ;;  %p5572_p3 = por %p5571_p4, %p5570_p1 }
  0x19   : > { %p5566_p0 = pneg %p5565_p13 }
  0x1b   : > { %p5573_p2 = pnand %p5572_p3, %p5566_p0 }
  0x1d   : > { %5576 = shalt.err (!%p5573_p2)
}
  0x1e   : > { %s5590_s26 = smov 64   ;;  %s5591_s27 = smov 4  }
  0x1f   : > { %5208 = dma.hbm_to_vmem [thread:$0]  (!%p5634_p5), %s5827_s1, 40960, %s126_s15, [#allocation11], %s5590_s26, %s5590_s26, %s5591_s27  }
  0x20   : > { %p5834_p6 = scmp.ne.s32.totalorder %s5832_s16, 0 }
  0x21   : > { %p5835_p8 = scmp.eq.s32.totalorder (!%p5834_p6), %s5621_s13, 0 }
  0x22   : > { %152 = sbr.rel (%p5834_p6) target bundleno = 2298 (0x8fa), region = 32 }
  0x29   : > { %5582 = dma.done.wait (%p5835_p8), [#allocation11], 40960   ;;  %p5836_p7 = pmov %p5835_p8 }
  0x2a   : > { %v199_v0 = vlaneseq  ;;  %p174_p2 = scmp.lt.s32.totalorder %s5621_s13, 1  ;;  %vm239_vm3 = vcmask 130048   ;;  %v5592_v4 = vmov 1.0|1.0   ;;  %v5229_v8 = vld [vmem:[#allocation10 + $0x40] sm:$0xff]   ;;  %v5233_v13 = vld [vmem:[#allocation10 + $0x48] sm:$0xff]  }
  0x2b   : > { %5584 = vsyncadd (%p5836_p7), [#allocation11], 4294926336  ;;  %v5230_v9 = vld [vmem:[#allocation10] sm:$0xff]   ;;  %4594 = vmatprep.subr.bf16.mxu1 %v5229_v8  ;;  %v5234_v14 = vld [vmem:[#allocation10 + $0x8] sm:$0xff]   ;;  %v5593_v36 = vmov 0.0   ;;  %vm5594_vm8 = vmmov 0  }
  0x2c   : > { %v5661_v1 = vshrl.u32 %v199_v0, 7  ;;  %v203_v2 = vand.u32 127, %v199_v0  ;;  %s5838_s13 = smov (!%p174_p2, %s5621_s13), 1  ;;  %v5231_v11 = vld [vmem:[#allocation10 + $0xc0] sm:$0xff]   ;;  %4595 = vmatpush3.bf16.msra.mxu1 %v5230_v9  ;;  %v5235_v15 = vld [vmem:[#allocation10 + $0xc8] sm:$0xff]   ;;  %v5237_v17 = vld [vmem:[#allocation10 + $0x50] sm:$0xff]  }
  0x2d   : > { %s4588_s30 = sshll.u32 %s5838_s13, 5  ;;  %v5232_v12 = vld [vmem:[#allocation10 + $0x80] sm:$0xff]   ;;  %4596 = vmatprep.subr.bf16.mxu1 %v5233_v13  ;;  %v5236_v16 = vld [vmem:[#allocation10 + $0x88] sm:$0xff]   ;;  %v5238_v18 = vld [vmem:[#allocation10 + $0x10] sm:$0xff]   ;;  %183 = vst [vmem:[#allocation2] sm:$0x3] %v5593_v36  ;;  %s181_s27 = scalar_lea.vmem %s5829_s3, %s5838_s13 }
  0x2e   : > { %v201_v3 = vadd.s32 8, %v5661_v1  ;;  %vm204_vm0 = vcmp.eq.s32.totalorder %v5661_v1, %v203_v2  ;;  %s178_s6 = scalar_lea.vmem %s5826_s0, %s4588_s30  ;;  %v5239_v19 = vld [vmem:[#allocation10 + $0xd0] sm:$0xff]   ;;  %v5241_v21 = vld [vmem:[#allocation10 + $0x58] sm:$0xff]   ;;  %v5245_v25 = vld [vmem:[#allocation10 + $0x60] sm:$0xff]   ;;  %184 = vst [vmem:[#allocation2 + $0x42] sm:$0x3f] %v5593_v36 }
  0x2f   : > { %v5225_v5 = vld [vmem:[%s178_s6] sm:$0xff]   ;;  %v5226_v6 = vld [vmem:[%s178_s6 + $0x8] sm:$0xff]   ;;  %v5227_v7 = vld [vmem:[%s178_s6 + $0x10] sm:$0xff]   ;;  %185 = vst [vmem:[#allocation3] sm:$0x3] %v5593_v36 }
  0x30   : > { %vm205_vm1 = vcmp.eq.s32.totalorder %v201_v3, %v203_v2  ;;  %5033 = vmatprep.mubr.msk.bf16.mxu0 %vm239_vm3, %v5225_v5  ;;  %v5228_v10 = vld [vmem:[%s178_s6 + $0x18] sm:$0xff]   ;;  %4597 = vmatpush3.bf16.msra.mxu1 %v5234_v14  ;;  %v5240_v20 = vld [vmem:[#allocation10 + $0x90] sm:$0xff]   ;;  %v5242_v22 = vld [vmem:[#allocation10 + $0x18] sm:$0xff]   ;;  %186 = vst [vmem:[#allocation3 + $0x22] sm:$0x3f] %v5593_v36 }
  0x31   : > { %vm4253_vm2 = vmpackc.low %vm205_vm1, %vm204_vm0  ;;  %4598 = vmatprep.subr.bf16.mxu1 %v5237_v17  ;;  %v5243_v23 = vld [vmem:[#allocation10 + $0xd8] sm:$0xff]   ;;  %v5246_v26 = vld [vmem:[#allocation10 + $0x20] sm:$0xff]   ;;  %187 = vst [vmem:[#allocation4] sm:$0x3] %v5593_v36 }
  0x32   : > { %5031 = vmatprep.subr.msk.bf16.mxu0 %vm4253_vm2, %v5592_v4  ;;  %v5244_v24 = vld [vmem:[#allocation10 + $0x98] sm:$0xff]   ;;  %v5247_v27 = vld [vmem:[#allocation10 + $0xe0] sm:$0xff]   ;;  %v5249_v29 = vld [vmem:[#allocation10 + $0x68] sm:$0xff]   ;;  %188 = vst [vmem:[#allocation4 + $0x12] sm:$0x3f] %v5593_v36 }
  0x33   : > { %5032 = vmatpush3.bf16.msk.msra.mxu0 %vm4253_vm2, %v5592_v4  ;;  %v5248_v28 = vld [vmem:[#allocation10 + $0xa0] sm:$0xff]   ;;  %v5250_v30 = vld [vmem:[#allocation10 + $0x28] sm:$0xff]   ;;  %v5253_v33 = vld [vmem:[#allocation10 + $0x70] sm:$0xff]   ;;  %189 = vst [vmem:[#allocation5] sm:$0x3] %v5593_v36 }
  0x34   : > { %4622 = vmatprep.subr.bf16.mxu0 %v5231_v11  ;;  %4599 = vmatpush3.bf16.msra.mxu1 %v5238_v18  ;;  %v5251_v31 = vld [vmem:[#allocation10 + $0xe8] sm:$0xff]   ;;  %v5254_v34 = vld [vmem:[#allocation10 + $0x30] sm:$0xff]   ;;  %190 = vst [vmem:[#allocation5 + $0xa] sm:$0x3f] %v5593_v36  ;;  %191 = vst [vmem:[#allocation6] sm:$0x3] %v5593_v36 }
  0x35   : > { %4600 = vmatprep.subr.bf16.mxu1 %v5241_v21  ;;  %v5252_v32 = vld [vmem:[#allocation10 + $0xa8] sm:$0xff]   ;;  %v5255_v35 = vld [vmem:[#allocation10 + $0xf0] sm:$0xff]   ;;  %192 = vst [vmem:[#allocation6 + $0x6] sm:$0x3] %v5593_v36  ;;  %193 = vst [vmem:[#allocation7] sm:$0x3] %v5593_v36 }
  0x36   : > { %5034 = vmatmul.mubr.msk.bf16.vlgmr.msra.gmra.mrb[0].mxu0 %vm239_vm3, %v5226_v6  ;;  %194 = vst [vmem:[#allocation7 + $0x4] sm:$0xf] %v5593_v36  ;;  %195 = vst [vmem:[#allocation8] sm:$0x3] %v5593_v36  ;;  %v5256_v37 = vld [vmem:[#allocation10 + $0xb0] sm:$0xff]   ;;  %v5257_v38 = vld [vmem:[#allocation10 + $0x78] sm:$0xff]  }
  0x37   : > { %5037 = vmatprep.mubr.msk.bf16.mxu0 %vm239_vm3, %v5227_v7  ;;  %4623 = vmatpush3.bf16.msra.mxu0 %v5232_v12  ;;  %196 = vst [vmem:[#allocation8 + $0x3] sm:$0x1f] %v5593_v36  ;;  %197 = vst [vmem:[#allocation9] sm:$0x3] %v5593_v36  ;;  %v5258_v39 = vld [vmem:[#allocation10 + $0x38] sm:$0xff]   ;;  %v5261_v42 = vld [vmem:[#allocation10 + $0x100] sm:$0xff]  }
  0x38   : > { %4624 = vmatprep.subr.bf16.mxu0 %v5235_v15  ;;  %4601 = vmatpush3.bf16.msra.mxu1 %v5242_v22  ;;  %198 = vst [vmem:[#allocation9 + $0x3] sm:$0x1f] %v5593_v36  ;;  %v5259_v40 = vld [vmem:[#allocation10 + $0xf8] sm:$0xff]   ;;  %v5262_v62 = vld [vmem:[#allocation10 + $0x108] sm:$0xff]   ;;  %v5263_v0 = vld [vmem:[#allocation10 + $0x110] sm:$0xff]  }
  0x39   : > { %4602 = vmatprep.subr.bf16.mxu1 %v5245_v25  ;;  %v5260_v41 = vld [vmem:[#allocation10 + $0xb8] sm:$0xff]   ;;  %v5265_v18 = vld [vmem:[#allocation10 + $0x120] sm:$0xff]  }
  0x3a   : > { %v5264_v8 = vld [vmem:[#allocation10 + $0x118] sm:$0xff]   ;;  %v5269_v25 = vld [vmem:[#allocation10 + $0x180] sm:$0xff]  }
  0x3b   : > { %4625 = vmatpush3.bf16.msra.mxu0 %v5236_v16  ;;  %v5268_v21 = vld [vmem:[#allocation10 + $0x138] sm:$0xff]  }
  0x3c   : > { %4626 = vmatprep.subr.bf16.mxu0 %v5239_v19  ;;  %4603 = vmatpush3.bf16.msra.mxu1 %v5246_v26  ;;  %v5266_v19 = vld [vmem:[#allocation10 + $0x128] sm:$0xff]   ;;  %v5270_v26 = vld [vmem:[#allocation10 + $0x140] sm:$0xff]  }
  0x3d   : > { %4604 = vmatprep.subr.bf16.mxu1 %v5249_v29  ;;  %v5273_v29 = vld [vmem:[#allocation10 + $0x188] sm:$0xff]  }
  0x3e   : > { %5038 = vmatmul.mubr.msk.bf16.gmra.mrb[4].mxu0 %vm239_vm3, %v5228_v10 }
  0x3f   : > { %4627 = vmatpush3.bf16.msra.mxu0 %v5240_v20  ;;  %v5267_v20 = vld [vmem:[#allocation10 + $0x130] sm:$0xff]  }
  0x40   : > { %4628 = vmatprep.subr.bf16.mxu0 %v5243_v23  ;;  %4605 = vmatpush3.bf16.msra.mxu1 %v5250_v30  ;;  %v5275_v30 = vld [vmem:[#allocation10 + $0x208] sm:$0xff]  }
  0x41   : > { %4606 = vmatprep.subr.bf16.mxu1 %v5253_v33  ;;  %v5277_v33 = vld [vmem:[#allocation10 + $0x190] sm:$0xff]  }
  0x43   : > { %4629 = vmatpush3.bf16.msra.mxu0 %v5244_v24 }
  0x44   : > { %4630 = vmatprep.subr.bf16.mxu0 %v5247_v27  ;;  %4607 = vmatpush3.bf16.msra.mxu1 %v5254_v34  ;;  %v5271_v27 = vld [vmem:[#allocation10 + $0x200] sm:$0xff]   ;;  %v5278_v34 = vld [vmem:[#allocation10 + $0x150] sm:$0xff]  }
  0x45   : > { %4608 = vmatprep.subr.bf16.mxu1 %v5257_v38  ;;  %v5281_v38 = vld [vmem:[#allocation10 + $0x198] sm:$0xff]  }
  0x47   : > { %4631 = vmatpush3.bf16.msra.mxu0 %v5248_v28  ;;  %v5272_v28 = vld [vmem:[#allocation10 + $0x1c0] sm:$0xff]  }
  0x48   : > { %4632 = vmatprep.subr.bf16.mxu0 %v5251_v31  ;;  %4609 = vmatpush3.bf16.msra.mxu1 %v5258_v39  ;;  %v5274_v31 = vld [vmem:[#allocation10 + $0x148] sm:$0xff]   ;;  %v5282_v39 = vld [vmem:[#allocation10 + $0x158] sm:$0xff]  }
  0x49   : > { %5041 = vmatprep.subr.bf16.mxu1 %v5261_v42 }
  0x4b   : > { %4633 = vmatpush3.bf16.msra.mxu0 %v5252_v32  ;;  %v5276_v32 = vld [vmem:[#allocation10 + $0x1c8] sm:$0xff]  }
  0x4c   : > { %4634 = vmatprep.subr.bf16.mxu0 %v5255_v35  ;;  %v5279_v35 = vld [vmem:[#allocation10 + $0x210] sm:$0xff]  }
  0x4f   : > { %4635 = vmatpush3.bf16.msra.mxu0 %v5256_v37  ;;  %v5280_v37 = vld [vmem:[#allocation10 + $0x1d0] sm:$0xff]  }
  0x50   : > { %4636 = vmatprep.subr.bf16.mxu0 %v5259_v40  ;;  %v5283_v40 = vld [vmem:[#allocation10 + $0x218] sm:$0xff]  }
  0x53   : > { %4637 = vmatpush3.bf16.msra.mxu0 %v5260_v41  ;;  %v5284_v41 = vld [vmem:[#allocation10 + $0x1d8] sm:$0xff]  }
  0x54   : > { %4660 = vmatprep.subr.bf16.mxu0 %v5269_v25 }
 0x109   : > { %v5035_v43 = vpop.f32.mrb[0].mxu0 }
 0x10a   : > { %319 = vst [vmem:[#allocation2 + $0x12] sm:$0xff] %v5035_v43  ;;  %v286_v44 = vpop.f32.mrb[1].mxu0  ;;  %v5286_v43 = vld [vmem:[#allocation10 + $0x160] sm:$0xff]  }
 0x10b   : > { %317 = vst [vmem:[#allocation2 + $0x2] sm:$0xff] %v286_v44  ;;  %v5036_v45 = vpop.f32.mrb[2].mxu0  ;;  %v5287_v44 = vld [vmem:[#allocation10 + $0x220] sm:$0xff]  }
 0x10c   : > { %320 = vst [vmem:[#allocation2 + $0x1a] sm:$0xff] %v5036_v45  ;;  %v289_v46 = vpop.f32.mrb[3].mxu0  ;;  %v5288_v45 = vld [vmem:[#allocation10 + $0x1e0] sm:$0xff]  }
 0x10d   : > { %318 = vst [vmem:[#allocation2 + $0xa] sm:$0xff] %v289_v46  ;;  %v5289_v46 = vld [vmem:[#allocation10 + $0x1a8] sm:$0xff]  }
 0x111   : > { %v5039_v47 = vpop.f32.mrb[4].mxu0 }
 0x112   : > { %323 = vst [vmem:[#allocation2 + $0x32] sm:$0xff] %v5039_v47  ;;  %v302_v48 = vpop.f32.mrb[5].mxu0  ;;  %v5290_v47 = vld [vmem:[#allocation10 + $0x168] sm:$0xff]  }
 0x113   : > { %321 = vst [vmem:[#allocation2 + $0x22] sm:$0xff] %v302_v48  ;;  %v5040_v49 = vpop.f32.mrb[6].mxu0  ;;  %v351_v50 = vld [vmem:[#allocation2 + $0x13] ss:$2 sm:$0xff]  ;;  %v343_v51 = vld [vmem:[#allocation2 + $0x12] ss:$2 sm:$0xff] }
 0x114   : > { %324 = vst [vmem:[#allocation2 + $0x3a] sm:$0xff] %v5040_v49  ;;  %v305_v52 = vpop.f32.mrb[7].mxu0  ;;  %v333_v53 = vld [vmem:[#allocation2 + $0x1] ss:$2 sm:$0xff]  ;;  %v335_v54 = vld [vmem:[#allocation2 + $0x11] ss:$2 sm:$0xff] }
 0x115   : > { %322 = vst [vmem:[#allocation2 + $0x2a] sm:$0xff] %v305_v52  ;;  %v365_v55 = vpack.c.bf16 %v335_v54, %v333_v53  ;;  %v349_v56 = vld [vmem:[#allocation2 + $0x3] ss:$2 sm:$0xff]  ;;  %v325_v57 = vld [vmem:[#allocation2] ss:$2 sm:$0xff] }
 0x116   : > { %v327_v58 = vld [vmem:[#allocation2 + $0x10] ss:$2 sm:$0xff]  ;;  %v367_v59 = vpack.c.bf16 %v351_v50, %v349_v56  ;;  %v5291_v48 = vld [vmem:[#allocation10 + $0x228] sm:$0xff]   ;;  %v5293_v50 = vld [vmem:[#allocation10 + $0x1b0] sm:$0xff]  }
 0x117   : > { %v364_v60 = vpack.c.bf16 %v327_v58, %v325_v57  ;;  %v341_v61 = vld [vmem:[#allocation2 + $0x2] ss:$2 sm:$0xff]  ;;  %731 = vmatprep.mubr.bf16.mxu1 %v365_v55  ;;  %v5694_v58 = vsub.s32 0, %v5661_v1 }
 0x118   : > { %v366_v63 = vpack.c.bf16 %v343_v51, %v341_v61  ;;  %780 = vmatprep.mubr.bf16.mxu0 %v367_v59  ;;  %v357_v15 = vld [vmem:[#allocation2 + $0x4] ss:$2 sm:$0xff]  ;;  %v454_v59 = vld [vmem:[%s5828_s2] sm:$0x7] }
 0x119   : > { %732 = vmatmul.mubr.bf16.vlgmr.msra.gmra.mrb[0].mxu1 %v364_v60  ;;  %v5292_v49 = vld [vmem:[#allocation10 + $0x1e8] sm:$0xff]   ;;  %v5294_v51 = vld [vmem:[#allocation10 + $0x170] sm:$0xff]   ;;  %v5297_v54 = vld [vmem:[#allocation10 + $0x1b8] sm:$0xff]   ;;  %v458_v61 = vrot.slane %v454_v59, %v5694_v58 }
 0x11a   : > { %781 = vmatmul.mubr.bf16.vlgmr.msra.gmra.mrb[8].mxu0 %v366_v63  ;;  %5042 = vmatpush3.bf16.msra.mxu1 %v5261_v42  ;;  %v359_v3 = vld [vmem:[#allocation2 + $0x14] ss:$2 sm:$0xff]  ;;  %v5295_v52 = vld [vmem:[#allocation10 + $0x230] sm:$0xff]  }
 0x11b   : > { %5043 = vmatprep.subr.bf16.mxu1 %v5262_v62  ;;  %v355_v2 = vld [vmem:[#allocation2 + $0x33] ss:$2 sm:$0xff]  ;;  %v347_v4 = vld [vmem:[#allocation2 + $0x32] ss:$2 sm:$0xff]  ;;  %v368_v17 = vpack.c.bf16 %v359_v3, %v357_v15  ;;  %4661 = vmatpush3.bf16.msra.mxu0 %v5270_v26  ;;  %v5296_v53 = vld [vmem:[#allocation10 + $0x1f0] sm:$0xff]  }
 0x11c   : > { %v337_v5 = vld [vmem:[#allocation2 + $0x21] ss:$2 sm:$0xff]  ;;  %v339_v6 = vld [vmem:[#allocation2 + $0x31] ss:$2 sm:$0xff]  ;;  %v329_v7 = vld [vmem:[#allocation2 + $0x20] ss:$2 sm:$0xff]  ;;  %4662 = vmatprep.subr.bf16.mxu0 %v5273_v29 }
 0x11d   : > { %v370_v9 = vpack.c.bf16 %v339_v6, %v337_v5  ;;  %v331_v10 = vld [vmem:[#allocation2 + $0x30] ss:$2 sm:$0xff]  ;;  %v353_v11 = vld [vmem:[#allocation2 + $0x23] ss:$2 sm:$0xff] }
 0x11e   : > { %5044 = vmatpush3.bf16.msra.mxu1 %v5262_v62  ;;  %v345_v12 = vld [vmem:[#allocation2 + $0x22] ss:$2 sm:$0xff]  ;;  %v369_v13 = vpack.c.bf16 %v331_v10, %v329_v7  ;;  %v372_v14 = vpack.c.bf16 %v355_v2, %v353_v11  ;;  %v5285_v42 = vld [vmem:[#allocation10 + $0x1a0] sm:$0xff]  }
 0x11f   : > { %5045 = vmatprep.subr.bf16.mxu1 %v5263_v0  ;;  %v371_v16 = vpack.c.bf16 %v347_v4, %v345_v12  ;;  %739 = vmatprep.mubr.bf16.mxu1 %v370_v9  ;;  %v361_v22 = vld [vmem:[#allocation2 + $0x24] ss:$2 sm:$0xff]  ;;  %v363_v23 = vld [vmem:[#allocation2 + $0x34] ss:$2 sm:$0xff] }
 0x120   : > { %788 = vmatprep.mubr.bf16.mxu0 %v372_v14  ;;  %v373_v24 = vpack.c.bf16 %v363_v23, %v361_v22  ;;  %4663 = vmatpush3.bf16.msra.mxu0 %v5274_v31  ;;  %v5299_v55 = vld [vmem:[#allocation10 + $0x238] sm:$0xff]   ;;  %v5704_v31 = vsub.s32 2, %v5661_v1 }
 0x121   : > { %740 = vmatmul.mubr.bf16.gmra.mrb[4].mxu1 %v369_v13  ;;  %4664 = vmatprep.subr.bf16.mxu0 %v5277_v33  ;;  %v5298_v56 = vld [vmem:[#allocation10 + $0x178] sm:$0xff]  }
 0x122   : > { %5046 = vmatpush3.bf16.msra.mxu1 %v5263_v0  ;;  %5057 = vmatprep.mubr.bf16.mxu1 %v368_v17  ;;  %v5300_v57 = vld [vmem:[#allocation10 + $0x1f8] sm:$0xff]  }
 0x123   : > { %789 = vmatmul.mubr.bf16.gmra.mrb[12].mxu0 %v371_v16  ;;  %5047 = vmatprep.subr.bf16.mxu1 %v5264_v8 }
 0x124   : > { %4665 = vmatpush3.bf16.msra.mxu0 %v5278_v34 }
 0x125   : > { %4666 = vmatprep.subr.bf16.mxu0 %v5281_v38 }
 0x126   : > { %5048 = vmatpush3.bf16.msra.mxu1 %v5264_v8 }
 0x127   : > { %5049 = vmatprep.subr.bf16.mxu1 %v5265_v18 }
 0x128   : > { %4667 = vmatpush3.bf16.msra.mxu0 %v5282_v39 }
 0x129   : > { %4668 = vmatprep.subr.bf16.mxu0 %v5285_v42  ;;  %v869_v42 = vrot.slane %v454_v59, %v5704_v31 }
 0x12a   : > { %5050 = vmatpush3.bf16.msra.mxu1 %v5265_v18 }
 0x12b   : > { %5051 = vmatprep.subr.bf16.mxu1 %v5266_v19 }
 0x12c   : > { %4669 = vmatpush3.bf16.msra.mxu0 %v5286_v43 }
 0x12d   : > { %4670 = vmatprep.subr.bf16.mxu0 %v5289_v46 }
 0x12e   : > { %5052 = vmatpush3.bf16.msra.mxu1 %v5266_v19 }
 0x12f   : > { %5053 = vmatprep.subr.bf16.mxu1 %v5267_v20 }
 0x130   : > { %4671 = vmatpush3.bf16.msra.mxu0 %v5290_v47 }
 0x131   : > { %4672 = vmatprep.subr.bf16.mxu0 %v5293_v50 }
 0x132   : > { %5054 = vmatpush3.bf16.msra.mxu1 %v5267_v20 }
 0x133   : > { %5055 = vmatprep.subr.bf16.mxu1 %v5268_v21 }
 0x134   : > { %4673 = vmatpush3.bf16.msra.mxu0 %v5294_v51 }
 0x135   : > { %4674 = vmatprep.subr.bf16.mxu0 %v5297_v54 }
 0x136   : > { %5056 = vmatpush3.bf16.msra.mxu1 %v5268_v21 }
 0x137   : > { %4682 = vmatprep.subr.bf16.mxu1 %v5271_v27 }
 0x138   : > { %4675 = vmatpush3.bf16.msra.mxu0 %v5298_v56 }
 0x139   : > { %5058 = vmatmul.mubr.bf16.vlgmr.msra.gmra.mrb[8].mxu1 %v373_v24  ;;  %5061 = vmatprep.subr.bf16.mxu0 %v5593_v36 }
 0x13a   : > { %4683 = vmatpush3.bf16.msra.mxu1 %v5272_v28 }
 0x13b   : > { %4684 = vmatprep.subr.bf16.mxu1 %v5275_v30  ;;  %v5701_v30 = vsub.s32 1, %v5661_v1 }
 0x13e   : > { %4685 = vmatpush3.bf16.msra.mxu1 %v5276_v32 }
 0x13f   : > { %4686 = vmatprep.subr.bf16.mxu1 %v5279_v35  ;;  %v861_v35 = vrot.slane %v454_v59, %v5701_v30 }
 0x142   : > { %4687 = vmatpush3.bf16.msra.mxu1 %v5280_v37 }
 0x143   : > { %4688 = vmatprep.subr.bf16.mxu1 %v5283_v40 }
 0x146   : > { %4689 = vmatpush3.bf16.msra.mxu1 %v5284_v41 }
 0x147   : > { %4690 = vmatprep.subr.bf16.mxu1 %v5287_v44 }
 0x14a   : > { %4691 = vmatpush3.bf16.msra.mxu1 %v5288_v45 }
 0x14b   : > { %4692 = vmatprep.subr.bf16.mxu1 %v5291_v48 }
 0x14e   : > { %4693 = vmatpush3.bf16.msra.mxu1 %v5292_v49 }
 0x14f   : > { %4694 = vmatprep.subr.bf16.mxu1 %v5295_v52 }
 0x152   : > { %4695 = vmatpush3.bf16.msra.mxu1 %v5296_v53 }
 0x153   : > { %4696 = vmatprep.subr.bf16.mxu1 %v5299_v55 }
 0x156   : > { %4697 = vmatpush3.bf16.msra.mxu1 %v5300_v57 }
 0x1ec   : > { %v4610_v60 = vpop.f32.mrb[0].mxu1 }
 0x1ed   : > { %v4638_v62 = vpop.f32.mrb[8].mxu0  ;;  %v4611_v63 = vpop.f32.mrb[1].mxu1 }
 0x1ee   : > { %v4612_v0 = vadd.f32 %v4611_v63, %v4610_v60  ;;  %v4639_v2 = vpop.f32.mrb[9].mxu0  ;;  %v4613_v3 = vpop.f32.mrb[2].mxu1 }
 0x1ef   : > { %v4640_v4 = vadd.f32 %v4639_v2, %v4638_v62  ;;  %v4641_v5 = vpop.f32.mrb[10].mxu0  ;;  %v4614_v6 = vpop.f32.mrb[3].mxu1 }
 0x1f0   : > { %v734_v7 = vadd.f32 %v4612_v0, %v458_v61  ;;  %v4615_v8 = vadd.f32 %v4614_v6, %v4613_v3  ;;  %v4642_v9 = vpop.f32.mrb[11].mxu0 }
 0x1f1   : > { %v4643_v10 = vadd.f32 %v4642_v9, %v4641_v5  ;;  %v5302_v9 = vld [vmem:[#allocation10 + $0x248] sm:$0xff]  }
 0x1f2   : > { %v737_v11 = vadd.f32 %v4615_v8, %v458_v61  ;;  %v783_v12 = vadd.f32 %v4640_v4, %v734_v7 }
 0x1f4   : > { %v4616_v13 = vpop.f32.mrb[4].mxu1  ;;  %v786_v14 = vadd.f32 %v4643_v10, %v737_v11  ;;  %v5303_v10 = vld [vmem:[#allocation10 + $0x250] sm:$0xff]   ;;  %v5304_v11 = vld [vmem:[#allocation10 + $0x258] sm:$0xff]  }
 0x1f5   : > { %v4617_v15 = vpop.f32.mrb[5].mxu1 }
 0x1f6   : > { %v4618_v16 = vadd.f32 %v4617_v15, %v4616_v13  ;;  %v4619_v17 = vpop.f32.mrb[6].mxu1  ;;  %v4644_v18 = vpop.f32.mrb[12].mxu0  ;;  %v5306_v13 = vld [vmem:[#allocation10 + $0x268] sm:$0xff]   ;;  %v5308_v15 = vld [vmem:[#allocation10 + $0x278] sm:$0xff]  }
 0x1f7   : > { %v4620_v19 = vpop.f32.mrb[7].mxu1  ;;  %v4645_v20 = vpop.f32.mrb[13].mxu0 }
 0x1f8   : > { %v742_v21 = vadd.f32 %v4618_v16, %v458_v61  ;;  %v4621_v22 = vadd.f32 %v4620_v19, %v4619_v17  ;;  %v4646_v23 = vadd.f32 %v4645_v20, %v4644_v18  ;;  %v4647_v24 = vpop.f32.mrb[14].mxu0  ;;  %v5309_v19 = vld [vmem:[#allocation10 + $0x2c0] sm:$0xff]  }
 0x1f9   : > { %v4648_v25 = vpop.f32.mrb[15].mxu0  ;;  %v5310_v20 = vld [vmem:[#allocation10 + $0x280] sm:$0xff]   ;;  %4713 = vmatprep.subr.bf16.mxu1 %v5309_v19 }
 0x1fa   : > { %v745_v26 = vadd.f32 %v4621_v22, %v458_v61  ;;  %v4649_v27 = vadd.f32 %v4648_v25, %v4647_v24  ;;  %v791_v28 = vadd.f32 %v4646_v23, %v742_v21  ;;  %v5301_v61 = vld [vmem:[#allocation10 + $0x240] sm:$0xff]   ;;  %v5313_v23 = vld [vmem:[#allocation10 + $0x2c8] sm:$0xff]  }
 0x1fb   : > { %v5311_v21 = vld [vmem:[#allocation10 + $0x340] sm:$0xff]   ;;  %v5315_v24 = vld [vmem:[#allocation10 + $0x348] sm:$0xff]  }
 0x1fc   : > { %v794_v29 = vadd.f32 %v4649_v27, %v745_v26  ;;  %v5312_v22 = vld [vmem:[#allocation10 + $0x300] sm:$0xff]   ;;  %v5314_v25 = vld [vmem:[#allocation10 + $0x288] sm:$0xff]   ;;  %v5317_v27 = vld [vmem:[#allocation10 + $0x2d0] sm:$0xff]  }
 0x1fd   : > { %v5316_v26 = vld [vmem:[#allocation10 + $0x308] sm:$0xff]  }
 0x20c   : > { %v5059_v32 = vpop.f32.mrb[8].mxu1 }
 0x20d   : > { %v840_v33 = vadd.f32 %v5059_v32, %v791_v28  ;;  %v831_v34 = vpop.f32.mrb[9].mxu1  ;;  %v5319_v28 = vld [vmem:[#allocation10 + $0x350] sm:$0xff]  }
 0x20e   : > { %v832_v37 = vadd.f32 %v831_v34, %v783_v12  ;;  %v5060_v38 = vpop.f32.mrb[10].mxu1  ;;  %v5305_v12 = vld [vmem:[#allocation10 + $0x260] sm:$0xff]   ;;  %v5320_v32 = vld [vmem:[#allocation10 + $0x310] sm:$0xff]   ;;  %v5322_v34 = vld [vmem:[#allocation10 + $0x298] sm:$0xff]  }
 0x20f   : > { %vm848_vm4 = vcmp.ge.f32.partialorder %v840_v33, 0.0  ;;  %v852_v39 = vmul.f32 0.2, %v840_v33  ;;  %v843_v40 = vadd.f32 %v5060_v38, %v794_v29  ;;  %v834_v41 = vpop.f32.mrb[11].mxu1  ;;  %v5318_v29 = vld [vmem:[#allocation10 + $0x290] sm:$0xff]   ;;  %v5325_v38 = vld [vmem:[#allocation10 + $0x2e0] sm:$0xff]  }
 0x210   : > { %vm846_vm5 = vcmp.ge.f32.partialorder %v832_v37, 0.0  ;;  %v850_v43 = vmul.f32 0.2, %v832_v37  ;;  %v835_v44 = vadd.f32 %v834_v41, %v786_v14  ;;  %v5307_v14 = vld [vmem:[#allocation10 + $0x270] sm:$0xff]   ;;  %v5328_v41 = vld [vmem:[#allocation10 + $0x320] sm:$0xff]  }
 0x211   : > { %v856_v45 = vsel %vm848_vm4, %v840_v33, %v852_v39  ;;  %vm849_vm6 = vcmp.ge.f32.partialorder %v843_v40, 0.0  ;;  %v853_v1 = vmul.f32 0.2, %v843_v40  ;;  %v5321_v33 = vld [vmem:[#allocation10 + $0x2d8] sm:$0xff]   ;;  %v5326_v39 = vld [vmem:[#allocation10 + $0x2a0] sm:$0xff]  }
 0x212   : > { %v864_v46 = vmul.f32 %v861_v35, %v856_v45  ;;  %v854_v47 = vsel %vm846_vm5, %v832_v37, %v850_v43  ;;  %vm847_vm7 = vcmp.ge.f32.partialorder %v835_v44, 0.0  ;;  %v851_v48 = vmul.f32 0.2, %v835_v44  ;;  %v5324_v37 = vld [vmem:[#allocation10 + $0x318] sm:$0xff]   ;;  %v5330_v43 = vld [vmem:[#allocation10 + $0x2a8] sm:$0xff]  }
 0x213   : > { %v862_v49 = vmul.f32 %v861_v35, %v854_v47  ;;  %v857_v50 = vsel %vm849_vm6, %v843_v40, %v853_v1  ;;  %v5327_v40 = vld [vmem:[#allocation10 + $0x360] sm:$0xff]   ;;  %v5332_v45 = vld [vmem:[#allocation10 + $0x328] sm:$0xff]   ;;  %v5333_v1 = vld [vmem:[#allocation10 + $0x2f0] sm:$0xff]  }
 0x214   : > { %v872_v51 = vadd.f32 %v869_v42, %v864_v46  ;;  %v865_v52 = vmul.f32 %v861_v35, %v857_v50  ;;  %v855_v53 = vsel %vm847_vm7, %v835_v44, %v851_v48  ;;  %v5331_v44 = vld [vmem:[#allocation10 + $0x368] sm:$0xff]   ;;  %v5334_v46 = vld [vmem:[#allocation10 + $0x2b0] sm:$0xff]   ;;  %v5339_v50 = vld [vmem:[#allocation10 + $0x378] sm:$0xff]  }
 0x215   : > { %v870_v54 = vadd.f32 %v869_v42, %v862_v49  ;;  %v863_v55 = vmul.f32 %v861_v35, %v855_v53  ;;  %v5323_v35 = vld [vmem:[#allocation10 + $0x358] sm:$0xff]   ;;  %v5335_v47 = vld [vmem:[#allocation10 + $0x370] sm:$0xff]   ;;  %v4299_v53 = vld [vmem:[%s5828_s2 + $0x4] sm:$0x7] }
 0x216   : > { %876 = vst [vmem:[#allocation3 + $0x12] sm:$0xff] %v872_v51  ;;  %v873_v56 = vadd.f32 %v869_v42, %v865_v52  ;;  %v5336_v48 = vld [vmem:[#allocation10 + $0x330] sm:$0xff]   ;;  %v5337_v49 = vld [vmem:[#allocation10 + $0x2f8] sm:$0xff]  }
 0x217   : > { %874 = vst [vmem:[#allocation3 + $0x2] sm:$0xff] %v870_v54  ;;  %v871_v57 = vadd.f32 %v869_v42, %v863_v55  ;;  %v5329_v42 = vld [vmem:[#allocation10 + $0x2e8] sm:$0xff]   ;;  %v5338_v51 = vld [vmem:[#allocation10 + $0x2b8] sm:$0xff]  }
 0x218   : > { %877 = vst [vmem:[#allocation3 + $0x1a] sm:$0xff] %v873_v56  ;;  %v5340_v52 = vld [vmem:[#allocation10 + $0x338] sm:$0xff]   ;;  %v988_v56 = vrot.slane %v4299_v53, %v5694_v58 }
 0x219   : > { %875 = vst [vmem:[#allocation3 + $0xa] sm:$0xff] %v871_v57 }
 0x21f   : > { %v892_v59 = vld [vmem:[#allocation3 + $0x13] ss:$2 sm:$0xff]  ;;  %v888_v60 = vld [vmem:[#allocation3 + $0x12] ss:$2 sm:$0xff] }
 0x220   : > { %v882_v62 = vld [vmem:[#allocation3 + $0x1] ss:$2 sm:$0xff]  ;;  %v884_v63 = vld [vmem:[#allocation3 + $0x11] ss:$2 sm:$0xff]  ;;  %v878_v4 = vld [vmem:[#allocation3] ss:$2 sm:$0xff] }
 0x221   : > { %v890_v0 = vld [vmem:[#allocation3 + $0x3] ss:$2 sm:$0xff]  ;;  %v898_v2 = vpack.c.bf16 %v884_v63, %v882_v62  ;;  %v880_v5 = vld [vmem:[#allocation3 + $0x10] ss:$2 sm:$0xff] }
 0x222   : > { %v900_v3 = vpack.c.bf16 %v892_v59, %v890_v0  ;;  %v886_v6 = vld [vmem:[#allocation3 + $0x2] ss:$2 sm:$0xff]  ;;  %v897_v7 = vpack.c.bf16 %v880_v5, %v878_v4 }
 0x223   : > { %v899_v8 = vpack.c.bf16 %v888_v60, %v886_v6  ;;  %1261 = vmatprep.mubr.bf16.mxu0 %v898_v2  ;;  %v894_v16 = vld [vmem:[#allocation3 + $0x4] ss:$2 sm:$0xff]  ;;  %v896_v17 = vld [vmem:[#allocation3 + $0x14] ss:$2 sm:$0xff] }
 0x224   : > { %1302 = vmatprep.mubr.bf16.mxu1 %v900_v3  ;;  %1262 = vmatmul.mubr.bf16.vlgmr.msra.gmra.mrb[16].mxu0 %v897_v7  ;;  %v901_v18 = vpack.c.bf16 %v896_v17, %v894_v16  ;;  %v1367_v17 = vrot.slane %v4299_v53, %v5704_v31 }
 0x225   : > { %1303 = vmatmul.mubr.bf16.vlgmr.msra.gmra.mrb[12].mxu1 %v899_v8  ;;  %5062 = vmatpush3.bf16.msra.mxu0 %v5301_v61 }
 0x226   : > { %5077 = vmatprep.mubr.msk.bf16.mxu0 %vm5594_vm8, %v5593_v36  ;;  %5063 = vmatprep.subr.bf16.mxu0 %v5593_v36 }
 0x227   : > { %4714 = vmatpush3.bf16.msra.mxu1 %v5310_v20 }
 0x228   : > { %4715 = vmatprep.subr.bf16.mxu1 %v5313_v23 }
 0x229   : > { %5064 = vmatpush3.bf16.msra.mxu0 %v5302_v9 }
 0x22a   : > { %5065 = vmatprep.subr.bf16.mxu0 %v5593_v36 }
 0x22b   : > { %4716 = vmatpush3.bf16.msra.mxu1 %v5314_v25 }
 0x22c   : > { %4717 = vmatprep.subr.bf16.mxu1 %v5317_v27 }
 0x22d   : > { %5066 = vmatpush3.bf16.msra.mxu0 %v5303_v10 }
 0x22e   : > { %5067 = vmatprep.subr.bf16.mxu0 %v5593_v36 }
 0x22f   : > { %4718 = vmatpush3.bf16.msra.mxu1 %v5318_v29 }
 0x230   : > { %4719 = vmatprep.subr.bf16.mxu1 %v5321_v33 }
 0x231   : > { %5068 = vmatpush3.bf16.msra.mxu0 %v5304_v11 }
 0x232   : > { %5069 = vmatprep.subr.bf16.mxu0 %v5593_v36 }
 0x233   : > { %4720 = vmatpush3.bf16.msra.mxu1 %v5322_v34  ;;  %v5341_v34 = vld [vmem:[#allocation10 + $0x380] sm:$0xff]  }
 0x234   : > { %4721 = vmatprep.subr.bf16.mxu1 %v5325_v38  ;;  %v5343_v38 = vld [vmem:[#allocation10 + $0x390] sm:$0xff]  }
 0x235   : > { %5070 = vmatpush3.bf16.msra.mxu0 %v5305_v12  ;;  %v1361_v12 = vrot.slane %v4299_v53, %v5701_v30  ;;  %v5357_v53 = vld [vmem:[#allocation10 + $0x410] sm:$0xff]  }
 0x236   : > { %5071 = vmatprep.subr.bf16.mxu0 %v5593_v36 }
 0x237   : > { %4722 = vmatpush3.bf16.msra.mxu1 %v5326_v39  ;;  %v5344_v39 = vld [vmem:[#allocation10 + $0x398] sm:$0xff]  }
 0x238   : > { %4723 = vmatprep.subr.bf16.mxu1 %v5329_v42  ;;  %v5347_v42 = vld [vmem:[#allocation10 + $0x3b0] sm:$0xff]  }
 0x239   : > { %5072 = vmatpush3.bf16.msra.mxu0 %v5306_v13 }
 0x23a   : > { %5073 = vmatprep.subr.bf16.mxu0 %v5593_v36 }
 0x23b   : > { %4724 = vmatpush3.bf16.msra.mxu1 %v5330_v43  ;;  %v5348_v43 = vld [vmem:[#allocation10 + $0x3b8] sm:$0xff]  }
 0x23c   : > { %4725 = vmatprep.subr.bf16.mxu1 %v5333_v1  ;;  %v5349_v1 = vld [vmem:[#allocation10 + $0x400] sm:$0xff]  }
 0x23d   : > { %5074 = vmatpush3.bf16.msra.mxu0 %v5307_v14 }
 0x23e   : > { %5075 = vmatprep.subr.bf16.mxu0 %v5593_v36 }
 0x23f   : > { %4726 = vmatpush3.bf16.msra.mxu1 %v5334_v46  ;;  %v5350_v46 = vld [vmem:[#allocation10 + $0x3c0] sm:$0xff]  }
 0x240   : > { %4727 = vmatprep.subr.bf16.mxu1 %v5337_v49  ;;  %v5353_v49 = vld [vmem:[#allocation10 + $0x408] sm:$0xff]  }
 0x241   : > { %5076 = vmatpush3.bf16.msra.mxu0 %v5308_v15 }
 0x242   : > { %4735 = vmatprep.subr.bf16.mxu0 %v5311_v21 }
 0x243   : > { %4728 = vmatpush3.bf16.msra.mxu1 %v5338_v51  ;;  %v5354_v51 = vld [vmem:[#allocation10 + $0x3c8] sm:$0xff]  }
 0x244   : > { %5078 = vmatmul.mubr.bf16.vlgmr.msra.gmra.mrb[20].mxu0 %v901_v18  ;;  %5081 = vmatprep.subr.bf16.mxu1 %v5593_v36 }
 0x245   : > { %4736 = vmatpush3.bf16.msra.mxu0 %v5312_v22 }
 0x246   : > { %4737 = vmatprep.subr.bf16.mxu0 %v5315_v24 }
 0x249   : > { %4738 = vmatpush3.bf16.msra.mxu0 %v5316_v26 }
 0x24a   : > { %4739 = vmatprep.subr.bf16.mxu0 %v5319_v28 }
 0x24d   : > { %4740 = vmatpush3.bf16.msra.mxu0 %v5320_v32 }
 0x24e   : > { %4741 = vmatprep.subr.bf16.mxu0 %v5323_v35 }
 0x251   : > { %4742 = vmatpush3.bf16.msra.mxu0 %v5324_v37  ;;  %v5342_v37 = vld [vmem:[#allocation10 + $0x388] sm:$0xff]  }
 0x252   : > { %4743 = vmatprep.subr.bf16.mxu0 %v5327_v40  ;;  %v5345_v40 = vld [vmem:[#allocation10 + $0x3a0] sm:$0xff]  }
 0x255   : > { %4744 = vmatpush3.bf16.msra.mxu0 %v5328_v41  ;;  %v5346_v41 = vld [vmem:[#allocation10 + $0x3a8] sm:$0xff]  }
 0x256   : > { %4745 = vmatprep.subr.bf16.mxu0 %v5331_v44 }
 0x259   : > { %4746 = vmatpush3.bf16.msra.mxu0 %v5332_v45 }
 0x25a   : > { %4747 = vmatprep.subr.bf16.mxu0 %v5335_v47  ;;  %v5351_v47 = vld [vmem:[#allocation10 + $0x480] sm:$0xff]  }
 0x25d   : > { %4748 = vmatpush3.bf16.msra.mxu0 %v5336_v48  ;;  %v5352_v48 = vld [vmem:[#allocation10 + $0x440] sm:$0xff]  }
 0x25e   : > { %4749 = vmatprep.subr.bf16.mxu0 %v5339_v50  ;;  %v5355_v50 = vld [vmem:[#allocation10 + $0x488] sm:$0xff]  }
 0x261   : > { %4750 = vmatpush3.bf16.msra.mxu0 %v5340_v52  ;;  %v5356_v52 = vld [vmem:[#allocation10 + $0x448] sm:$0xff]  }
 0x262   : > { %4766 = vmatprep.subr.bf16.mxu0 %v5349_v1 }
 0x2f7   : > { %v4676_v54 = vpop.f32.mrb[16].mxu0 }
 0x2f8   : > { %v4698_v55 = vpop.f32.mrb[12].mxu1  ;;  %v4677_v57 = vpop.f32.mrb[17].mxu0 }
 0x2f9   : > { %v4699_v59 = vpop.f32.mrb[13].mxu1  ;;  %v4678_v60 = vadd.f32 %v4677_v57, %v4676_v54  ;;  %v4679_v62 = vpop.f32.mrb[18].mxu0  ;;  %v5359_v54 = vld [vmem:[#allocation10 + $0x490] sm:$0xff]   ;;  %v5361_v57 = vld [vmem:[#allocation10 + $0x418] sm:$0xff]  }
 0x2fa   : > { %v4700_v61 = vadd.f32 %v4699_v59, %v4698_v55  ;;  %v4701_v63 = vpop.f32.mrb[14].mxu1  ;;  %v4680_v0 = vpop.f32.mrb[19].mxu0  ;;  %v5358_v55 = vld [vmem:[#allocation10 + $0x3d0] sm:$0xff]   ;;  %v5362_v59 = vld [vmem:[#allocation10 + $0x3d8] sm:$0xff]  }
 0x2fb   : > { %v4702_v2 = vpop.f32.mrb[15].mxu1  ;;  %v1264_v3 = vadd.f32 %v4678_v60, %v988_v56  ;;  %v4681_v4 = vadd.f32 %v4680_v0, %v4679_v62  ;;  %v5363_v60 = vld [vmem:[#allocation10 + $0x498] sm:$0xff]   ;;  %v5365_v62 = vld [vmem:[#allocation10 + $0x420] sm:$0xff]  }
 0x2fc   : > { %v4703_v5 = vadd.f32 %v4702_v2, %v4701_v63  ;;  %v5366_v63 = vld [vmem:[#allocation10 + $0x3e0] sm:$0xff]  }
 0x2fd   : > { %v1267_v6 = vadd.f32 %v4681_v4, %v988_v56  ;;  %v1305_v7 = vadd.f32 %v4700_v61, %v1264_v3  ;;  %v5360_v56 = vld [vmem:[#allocation10 + $0x450] sm:$0xff]   ;;  %v5364_v61 = vld [vmem:[#allocation10 + $0x458] sm:$0xff]   ;;  %v5367_v0 = vld [vmem:[#allocation10 + $0x4a0] sm:$0xff]  }
 0x2fe   : > { %v5368_v2 = vld [vmem:[#allocation10 + $0x460] sm:$0xff]   ;;  %v5369_v3 = vld [vmem:[#allocation10 + $0x428] sm:$0xff]  }
 0x2ff   : > { %v1308_v8 = vadd.f32 %v4703_v5, %v1267_v6  ;;  %v5370_v4 = vld [vmem:[#allocation10 + $0x3e8] sm:$0xff]  }
 0x300   : > { %v5371_v5 = vld [vmem:[#allocation10 + $0x4a8] sm:$0xff]  }
 0x301   : > { %v5372_v6 = vld [vmem:[#allocation10 + $0x468] sm:$0xff]  }
 0x317   : > { %v1345_v9 = vpop.f32.mrb[20].mxu0 }
 0x318   : > { %v1346_v10 = vadd.f32 %v1345_v9, %v1305_v7  ;;  %v5079_v11 = vpop.f32.mrb[21].mxu0  ;;  %v5373_v7 = vld [vmem:[#allocation10 + $0x430] sm:$0xff]  }
 0x319   : > { %v1348_v13 = vpop.f32.mrb[22].mxu0  ;;  %v5375_v9 = vld [vmem:[#allocation10 + $0x4b0] sm:$0xff]   ;;  %v5377_v11 = vld [vmem:[#allocation10 + $0x438] sm:$0xff]  }
 0x31a   : > { %vm1352_vm9 = vcmp.ge.f32.partialorder %v1346_v10, 0.0  ;;  %v1354_v14 = vmul.f32 0.2, %v1346_v10  ;;  %v1349_v15 = vadd.f32 %v1348_v13, %v1308_v8  ;;  %v5080_v16 = vpop.f32.mrb[23].mxu0  ;;  %v5374_v8 = vld [vmem:[#allocation10 + $0x3f0] sm:$0xff]   ;;  %v5378_v13 = vld [vmem:[#allocation10 + $0x3f8] sm:$0xff]  }
 0x31c   : > { %v1356_v18 = vsel %vm1352_vm9, %v1346_v10, %v1354_v14  ;;  %vm1353_vm10 = vcmp.ge.f32.partialorder %v1349_v15, 0.0  ;;  %v1355_v19 = vmul.f32 0.2, %v1349_v15  ;;  %v5376_v10 = vld [vmem:[#allocation10 + $0x470] sm:$0xff]   ;;  %v5380_v14 = vld [vmem:[#allocation10 + $0x478] sm:$0xff]  }
 0x31d   : > { %v1362_v20 = vmul.f32 %v1361_v12, %v1356_v18 }
 0x31e   : > { %v1357_v21 = vsel %vm1353_vm10, %v1349_v15, %v1355_v19  ;;  %v4340_v15 = vld [vmem:[%s5828_s2 + $0x8] sm:$0x7] }
 0x31f   : > { %v1368_v22 = vadd.f32 %v1367_v17, %v1362_v20  ;;  %v1363_v23 = vmul.f32 %v1361_v12, %v1357_v21  ;;  %v5379_v12 = vld [vmem:[#allocation10 + $0x4b8] sm:$0xff]   ;;  %v1472_v18 = vrot.slane %v4340_v15, %v5694_v58 }
 0x321   : > { %1370 = vst [vmem:[#allocation4 + $0x2] sm:$0xff] %v1368_v22  ;;  %v1369_v24 = vadd.f32 %v1367_v17, %v1363_v23 }
 0x323   : > { %1371 = vst [vmem:[#allocation4 + $0xa] sm:$0xff] %v1369_v24 }
 0x32a   : > { %v1374_v25 = vld [vmem:[#allocation4 + $0x1] ss:$2 sm:$0xff]  ;;  %v1372_v27 = vld [vmem:[#allocation4] ss:$2 sm:$0xff] }
 0x32b   : > { %v1378_v26 = vld [vmem:[#allocation4 + $0x3] ss:$2 sm:$0xff]  ;;  %v1382_v28 = vpack.c.bf16 %v1374_v25, %v1374_v25  ;;  %v1381_v32 = vpack.c.bf16 %v1372_v27, %v1372_v27  ;;  %v1376_v33 = vld [vmem:[#allocation4 + $0x2] ss:$2 sm:$0xff] }
 0x32c   : > { %v1384_v29 = vpack.c.bf16 %v1378_v26, %v1378_v26  ;;  %v1383_v35 = vpack.c.bf16 %v1376_v33, %v1376_v33  ;;  %v1380_v44 = vld [vmem:[#allocation4 + $0x4] ss:$2 sm:$0xff] }
 0x32d   : > { %1745 = vmatprep.mubr.bf16.mxu1 %v1382_v28  ;;  %v1385_v45 = vpack.c.bf16 %v1380_v44, %v1380_v44 }
 0x32e   : > { %1785 = vmatprep.mubr.bf16.mxu0 %v1384_v29  ;;  %1746 = vmatmul.mubr.bf16.vlgmr.msra.gmra.mrb[16].mxu1 %v1381_v32 }
 0x32f   : > { %1786 = vmatmul.mubr.bf16.vlgmr.msra.gmra.mrb[24].mxu0 %v1383_v35  ;;  %5082 = vmatpush3.bf16.msra.mxu1 %v5341_v34  ;;  %v1839_v34 = vrot.slane %v4340_v15, %v5701_v30 }
 0x330   : > { %5097 = vmatprep.mubr.msk.bf16.mxu1 %vm5594_vm8, %v5593_v36  ;;  %5083 = vmatprep.subr.bf16.mxu1 %v5593_v36 }
 0x331   : > { %4767 = vmatpush3.bf16.msra.mxu0 %v5350_v46 }
 0x332   : > { %4768 = vmatprep.subr.bf16.mxu0 %v5353_v49 }
 0x333   : > { %5084 = vmatpush3.bf16.msra.mxu1 %v5342_v37 }
 0x334   : > { %5085 = vmatprep.subr.bf16.mxu1 %v5593_v36 }
 0x335   : > { %4769 = vmatpush3.bf16.msra.mxu0 %v5354_v51  ;;  %v5382_v51 = vld [vmem:[#allocation10 + $0x4c8] sm:$0xff]  }
 0x336   : > { %4770 = vmatprep.subr.bf16.mxu0 %v5357_v53  ;;  %v5384_v53 = vld [vmem:[#allocation10 + $0x4d8] sm:$0xff]  }
 0x337   : > { %5086 = vmatpush3.bf16.msra.mxu1 %v5343_v38 }
 0x338   : > { %5087 = vmatprep.subr.bf16.mxu1 %v5593_v36 }
 0x339   : > { %4771 = vmatpush3.bf16.msra.mxu0 %v5358_v55  ;;  %v5386_v55 = vld [vmem:[#allocation10 + $0x4e8] sm:$0xff]  }
 0x33a   : > { %4772 = vmatprep.subr.bf16.mxu0 %v5361_v57  ;;  %v5388_v57 = vld [vmem:[#allocation10 + $0x4f8] sm:$0xff]  }
 0x33b   : > { %5088 = vmatpush3.bf16.msra.mxu1 %v5344_v39  ;;  %v1844_v39 = vrot.slane %v4340_v15, %v5704_v31  ;;  %v5406_v15 = vld [vmem:[#allocation10 + $0x520] sm:$0xff]  }
 0x33c   : > { %5089 = vmatprep.subr.bf16.mxu1 %v5593_v36 }
 0x33d   : > { %4773 = vmatpush3.bf16.msra.mxu0 %v5362_v59 }
 0x33e   : > { %4774 = vmatprep.subr.bf16.mxu0 %v5365_v62  ;;  %v5390_v62 = vld [vmem:[#allocation10 + $0x500] sm:$0xff]  }
 0x33f   : > { %5090 = vmatpush3.bf16.msra.mxu1 %v5345_v40 }
 0x340   : > { %5091 = vmatprep.subr.bf16.mxu1 %v5593_v36 }
 0x341   : > { %4775 = vmatpush3.bf16.msra.mxu0 %v5366_v63  ;;  %v5391_v63 = vld [vmem:[#allocation10 + $0x5c0] sm:$0xff]  }
 0x342   : > { %4776 = vmatprep.subr.bf16.mxu0 %v5369_v3  ;;  %v5395_v3 = vld [vmem:[#allocation10 + $0x5c8] sm:$0xff]  }
 0x343   : > { %5092 = vmatpush3.bf16.msra.mxu1 %v5346_v41 }
 0x344   : > { %5093 = vmatprep.subr.bf16.mxu1 %v5593_v36 }
 0x345   : > { %4777 = vmatpush3.bf16.msra.mxu0 %v5370_v4  ;;  %v5394_v4 = vld [vmem:[#allocation10 + $0x508] sm:$0xff]  }
 0x346   : > { %4778 = vmatprep.subr.bf16.mxu0 %v5373_v7  ;;  %v5399_v7 = vld [vmem:[#allocation10 + $0x5d0] sm:$0xff]  }
 0x347   : > { %5094 = vmatpush3.bf16.msra.mxu1 %v5347_v42 }
 0x348   : > { %5095 = vmatprep.subr.bf16.mxu1 %v5593_v36 }
 0x349   : > { %4779 = vmatpush3.bf16.msra.mxu0 %v5374_v8  ;;  %v5398_v8 = vld [vmem:[#allocation10 + $0x510] sm:$0xff]  }
 0x34a   : > { %4780 = vmatprep.subr.bf16.mxu0 %v5377_v11  ;;  %v5402_v11 = vld [vmem:[#allocation10 + $0x518] sm:$0xff]  }
 0x34b   : > { %5096 = vmatpush3.bf16.msra.mxu1 %v5348_v43  ;;  %v5381_v43 = vld [vmem:[#allocation10 + $0x4c0] sm:$0xff]  }
 0x34c   : > { %4788 = vmatprep.subr.bf16.mxu1 %v5351_v47 }
 0x34d   : > { %4781 = vmatpush3.bf16.msra.mxu0 %v5378_v13  ;;  %v5404_v13 = vld [vmem:[#allocation10 + $0x598] sm:$0xff]  }
 0x34e   : > { %5098 = vmatmul.mubr.bf16.vlgmr.msra.gmra.mrb[20].mxu1 %v1385_v45  ;;  %5101 = vmatprep.subr.bf16.mxu0 %v5593_v36 }
 0x34f   : > { %4789 = vmatpush3.bf16.msra.mxu1 %v5352_v48 }
 0x350   : > { %4790 = vmatprep.subr.bf16.mxu1 %v5355_v50 }
 0x353   : > { %4791 = vmatpush3.bf16.msra.mxu1 %v5356_v52  ;;  %v5383_v52 = vld [vmem:[#allocation10 + $0x4d0] sm:$0xff]  }
 0x354   : > { %4792 = vmatprep.subr.bf16.mxu1 %v5359_v54  ;;  %v5385_v54 = vld [vmem:[#allocation10 + $0x4e0] sm:$0xff]  }
 0x357   : > { %4793 = vmatpush3.bf16.msra.mxu1 %v5360_v56  ;;  %v5387_v56 = vld [vmem:[#allocation10 + $0x4f0] sm:$0xff]  }
 0x358   : > { %4794 = vmatprep.subr.bf16.mxu1 %v5363_v60 }
 0x35b   : > { %4795 = vmatpush3.bf16.msra.mxu1 %v5364_v61  ;;  %v5389_v61 = vld [vmem:[#allocation10 + $0x540] sm:$0xff]  }
 0x35c   : > { %4796 = vmatprep.subr.bf16.mxu1 %v5367_v0  ;;  %v5392_v0 = vld [vmem:[#allocation10 + $0x580] sm:$0xff]  }
 0x35f   : > { %4797 = vmatpush3.bf16.msra.mxu1 %v5368_v2  ;;  %v5393_v2 = vld [vmem:[#allocation10 + $0x548] sm:$0xff]  }
 0x360   : > { %4798 = vmatprep.subr.bf16.mxu1 %v5371_v5  ;;  %v5396_v5 = vld [vmem:[#allocation10 + $0x588] sm:$0xff]  }
 0x363   : > { %4799 = vmatpush3.bf16.msra.mxu1 %v5372_v6  ;;  %v5397_v6 = vld [vmem:[#allocation10 + $0x550] sm:$0xff]  }
 0x364   : > { %4800 = vmatprep.subr.bf16.mxu1 %v5375_v9  ;;  %v5400_v9 = vld [vmem:[#allocation10 + $0x590] sm:$0xff]  }
 0x367   : > { %4801 = vmatpush3.bf16.msra.mxu1 %v5376_v10  ;;  %v5401_v10 = vld [vmem:[#allocation10 + $0x558] sm:$0xff]  }
 0x368   : > { %4802 = vmatprep.subr.bf16.mxu1 %v5379_v12  ;;  %v5403_v12 = vld [vmem:[#allocation10 + $0x5d8] sm:$0xff]  }
 0x36b   : > { %4803 = vmatpush3.bf16.msra.mxu1 %v5380_v14  ;;  %v5405_v14 = vld [vmem:[#allocation10 + $0x560] sm:$0xff]  }
 0x36c   : > { %4819 = vmatprep.subr.bf16.mxu1 %v5389_v61 }
 0x401   : > { %v4729_v16 = vpop.f32.mrb[16].mxu1 }
 0x402   : > { %v4751_v17 = vpop.f32.mrb[24].mxu0  ;;  %v4730_v19 = vpop.f32.mrb[17].mxu1 }
 0x403   : > { %v4752_v20 = vpop.f32.mrb[25].mxu0  ;;  %v4731_v21 = vadd.f32 %v4730_v19, %v4729_v16  ;;  %v4732_v23 = vpop.f32.mrb[18].mxu1  ;;  %v5407_v16 = vld [vmem:[#allocation10 + $0x5e0] sm:$0xff]   ;;  %v5410_v19 = vld [vmem:[#allocation10 + $0x528] sm:$0xff]  }
 0x404   : > { %v4753_v22 = vadd.f32 %v4752_v20, %v4751_v17  ;;  %v4754_v24 = vpop.f32.mrb[26].mxu0  ;;  %v4733_v25 = vpop.f32.mrb[19].mxu1  ;;  %v5408_v17 = vld [vmem:[#allocation10 + $0x5a0] sm:$0xff]   ;;  %v5411_v20 = vld [vmem:[#allocation10 + $0x5e8] sm:$0xff]   ;;  %v5414_v23 = vld [vmem:[#allocation10 + $0x530] sm:$0xff]  }
 0x405   : > { %v4755_v26 = vpop.f32.mrb[27].mxu0  ;;  %v1748_v27 = vadd.f32 %v4731_v21, %v1472_v18  ;;  %v5409_v18 = vld [vmem:[#allocation10 + $0x568] sm:$0xff]   ;;  %v5415_v24 = vld [vmem:[#allocation10 + $0x5f0] sm:$0xff]  }
 0x406   : > { %v5412_v21 = vld [vmem:[#allocation10 + $0x5a8] sm:$0xff]   ;;  %v5416_v25 = vld [vmem:[#allocation10 + $0x5b0] sm:$0xff]   ;;  %v5417_v26 = vld [vmem:[#allocation10 + $0x578] sm:$0xff]  }
 0x407   : > { %v1788_v28 = vadd.f32 %v4753_v22, %v1748_v27  ;;  %v5413_v22 = vld [vmem:[#allocation10 + $0x570] sm:$0xff]   ;;  %v5419_v27 = vld [vmem:[#allocation10 + $0x5f8] sm:$0xff]  }
 0x421   : > { %v1827_v29 = vpop.f32.mrb[20].mxu1 }
 0x422   : > { %v1828_v32 = vadd.f32 %v1827_v29, %v1788_v28  ;;  %v5099_v33 = vpop.f32.mrb[21].mxu1  ;;  %v5418_v28 = vld [vmem:[#allocation10 + $0x538] sm:$0xff]  }
 0x423   : > { %v1830_v35 = vpop.f32.mrb[22].mxu1  ;;  %v5420_v29 = vld [vmem:[#allocation10 + $0x5b8] sm:$0xff]   ;;  %v4381_v33 = vld [vmem:[%s5828_s2 + $0xc] sm:$0x7] }
 0x424   : > { %vm1833_vm11 = vcmp.ge.f32.partialorder %v1828_v32, 0.0  ;;  %v1834_v37 = vmul.f32 0.2, %v1828_v32  ;;  %v5100_v38 = vpop.f32.mrb[23].mxu1 }
 0x426   : > { %v1835_v40 = vsel %vm1833_vm11, %v1828_v32, %v1834_v37  ;;  %v5429_v32 = vld [vmem:[#allocation10 + $0x680] sm:$0xff]   ;;  %v1947_v37 = vrot.slane %v4381_v33, %v5694_v58 }
 0x427   : > { %v1840_v41 = vmul.f32 %v1839_v34, %v1835_v40 }
 0x429   : > { %v1845_v42 = vadd.f32 %v1844_v39, %v1840_v41 }
 0x42b   : > { %1846 = vst [vmem:[#allocation5 + $0x2] sm:$0xff] %v1845_v42 }
 0x432   : > { %v1849_v44 = vld [vmem:[#allocation5 + $0x1] ss:$2 sm:$0xf]  ;;  %v1847_v47 = vld [vmem:[#allocation5] ss:$2 sm:$0xf] }
 0x433   : > { %v1853_v45 = vld [vmem:[#allocation5 + $0x3] ss:$2 sm:$0xf]  ;;  %v1857_v1 = vpack.c.bf16 %v1849_v44, %v1849_v44  ;;  %v1851_v48 = vld [vmem:[#allocation5 + $0x2] ss:$2 sm:$0xf]  ;;  %v1856_v49 = vpack.c.bf16 %v1847_v47, %v1847_v47 }
 0x434   : > { %v1859_v46 = vpack.c.bf16 %v1853_v45, %v1853_v45  ;;  %v1858_v50 = vpack.c.bf16 %v1851_v48, %v1851_v48  ;;  %v1855_v59 = vld [vmem:[#allocation5 + $0x4] ss:$2 sm:$0xf] }
 0x435   : > { %2220 = vmatprep.mubr.bf16.mxu0 %v1857_v1  ;;  %v1860_v60 = vpack.c.bf16 %v1855_v59, %v1855_v59  ;;  %v5421_v59 = vld [vmem:[#allocation10 + $0x600] sm:$0xff]  }
 0x436   : > { %2260 = vmatprep.mubr.bf16.mxu1 %v1859_v46  ;;  %2221 = vmatmul.mubr.bf16.vlgmr.msra.gmra.mrb[28].mxu0 %v1856_v49 }
 0x437   : > { %2261 = vmatmul.mubr.bf16.vlgmr.msra.gmra.mrb[24].mxu1 %v1858_v50  ;;  %5102 = vmatpush3.bf16.msra.mxu0 %v5381_v43  ;;  %v2314_v50 = vrot.slane %v4381_v33, %v5701_v30 }
 0x438   : > { %5117 = vmatprep.mubr.msk.bf16.mxu0 %vm5594_vm8, %v5593_v36  ;;  %5103 = vmatprep.subr.bf16.mxu0 %v5593_v36 }
 0x439   : > { %4820 = vmatpush3.bf16.msra.mxu1 %v5390_v62 }
 0x43a   : > { %4821 = vmatprep.subr.bf16.mxu1 %v5393_v2 }
 0x43b   : > { %5104 = vmatpush3.bf16.msra.mxu0 %v5382_v51 }
 0x43c   : > { %5105 = vmatprep.subr.bf16.mxu0 %v5593_v36 }
 0x43d   : > { %4822 = vmatpush3.bf16.msra.mxu1 %v5394_v4 }
 0x43e   : > { %4823 = vmatprep.subr.bf16.mxu1 %v5397_v6  ;;  %v5431_v6 = vld [vmem:[#allocation10 + $0x688] sm:$0xff]  }
 0x43f   : > { %5106 = vmatpush3.bf16.msra.mxu0 %v5383_v52 }
 0x440   : > { %5107 = vmatprep.subr.bf16.mxu0 %v5593_v36 }
 0x441   : > { %4824 = vmatpush3.bf16.msra.mxu1 %v5398_v8  ;;  %v5432_v8 = vld [vmem:[#allocation10 + $0x648] sm:$0xff]  }
 0x442   : > { %4825 = vmatprep.subr.bf16.mxu1 %v5401_v10  ;;  %v5423_v10 = vld [vmem:[#allocation10 + $0x610] sm:$0xff]  }
 0x443   : > { %5108 = vmatpush3.bf16.msra.mxu0 %v5384_v53 }
 0x444   : > { %5109 = vmatprep.subr.bf16.mxu0 %v5593_v36 }
 0x445   : > { %4826 = vmatpush3.bf16.msra.mxu1 %v5402_v11  ;;  %v5434_v11 = vld [vmem:[#allocation10 + $0x650] sm:$0xff]  }
 0x446   : > { %4827 = vmatprep.subr.bf16.mxu1 %v5405_v14  ;;  %v5426_v14 = vld [vmem:[#allocation10 + $0x628] sm:$0xff]  }
 0x447   : > { %5110 = vmatpush3.bf16.msra.mxu0 %v5385_v54  ;;  %v2319_v54 = vrot.slane %v4381_v33, %v5704_v31  ;;  %v5441_v33 = vld [vmem:[#allocation10 + $0x6b0] sm:$0xff]  }
 0x448   : > { %5111 = vmatprep.subr.bf16.mxu0 %v5593_v36 }
 0x449   : > { %4828 = vmatpush3.bf16.msra.mxu1 %v5406_v15  ;;  %v5427_v15 = vld [vmem:[#allocation10 + $0x630] sm:$0xff]  }
 0x44a   : > { %4829 = vmatprep.subr.bf16.mxu1 %v5409_v18 }
 0x44b   : > { %5112 = vmatpush3.bf16.msra.mxu0 %v5386_v55 }
 0x44c   : > { %5113 = vmatprep.subr.bf16.mxu0 %v5593_v36 }
 0x44d   : > { %4830 = vmatpush3.bf16.msra.mxu1 %v5410_v19  ;;  %v5435_v19 = vld [vmem:[#allocation10 + $0x698] sm:$0xff]  }
 0x44e   : > { %4831 = vmatprep.subr.bf16.mxu1 %v5413_v22  ;;  %v5438_v22 = vld [vmem:[#allocation10 + $0x660] sm:$0xff]  }
 0x44f   : > { %5114 = vmatpush3.bf16.msra.mxu0 %v5387_v56 }
 0x450   : > { %5115 = vmatprep.subr.bf16.mxu0 %v5593_v36 }
 0x451   : > { %4832 = vmatpush3.bf16.msra.mxu1 %v5414_v23  ;;  %v5439_v23 = vld [vmem:[#allocation10 + $0x6a8] sm:$0xff]  }
 0x452   : > { %4833 = vmatprep.subr.bf16.mxu1 %v5417_v26  ;;  %v2798_v26 = vld [vmem:[#allocation7 + $0x1] sm:$0x1] }
 0x453   : > { %5116 = vmatpush3.bf16.msra.mxu0 %v5388_v57 }
 0x454   : > { %4841 = vmatprep.subr.bf16.mxu0 %v5391_v63 }
 0x455   : > { %4834 = vmatpush3.bf16.msra.mxu1 %v5418_v28  ;;  %v5448_v28 = vld [vmem:[#allocation10 + $0x708] sm:$0xff]  }
 0x456   : > { %5118 = vmatmul.mubr.bf16.vlgmr.msra.gmra.mrb[32].mxu0 %v1860_v60  ;;  %5121 = vmatprep.subr.bf16.mxu1 %v5593_v36 }
 0x457   : > { %4842 = vmatpush3.bf16.msra.mxu0 %v5392_v0 }
 0x458   : > { %4843 = vmatprep.subr.bf16.mxu0 %v5395_v3 }
 0x45b   : > { %4844 = vmatpush3.bf16.msra.mxu0 %v5396_v5  ;;  %v5430_v5 = vld [vmem:[#allocation10 + $0x640] sm:$0xff]  }
 0x45c   : > { %4845 = vmatprep.subr.bf16.mxu0 %v5399_v7  ;;  %v5422_v7 = vld [vmem:[#allocation10 + $0x608] sm:$0xff]  }
 0x45f   : > { %4846 = vmatpush3.bf16.msra.mxu0 %v5400_v9  ;;  %v5433_v9 = vld [vmem:[#allocation10 + $0x690] sm:$0xff]  }
 0x460   : > { %4847 = vmatprep.subr.bf16.mxu0 %v5403_v12  ;;  %v5424_v12 = vld [vmem:[#allocation10 + $0x618] sm:$0xff]  }
 0x463   : > { %4848 = vmatpush3.bf16.msra.mxu0 %v5404_v13  ;;  %v5425_v13 = vld [vmem:[#allocation10 + $0x620] sm:$0xff]  }
 0x464   : > { %4849 = vmatprep.subr.bf16.mxu0 %v5407_v16  ;;  %v5428_v16 = vld [vmem:[#allocation10 + $0x638] sm:$0xff]  }
 0x467   : > { %4850 = vmatpush3.bf16.msra.mxu0 %v5408_v17 }
 0x468   : > { %4851 = vmatprep.subr.bf16.mxu0 %v5411_v20  ;;  %v5436_v20 = vld [vmem:[#allocation10 + $0x658] sm:$0xff]  }
 0x46b   : > { %4852 = vmatpush3.bf16.msra.mxu0 %v5412_v21  ;;  %v5437_v21 = vld [vmem:[#allocation10 + $0x6a0] sm:$0xff]  }
 0x46c   : > { %4853 = vmatprep.subr.bf16.mxu0 %v5415_v24  ;;  %v5445_v24 = vld [vmem:[#allocation10 + $0x700] sm:$0xff]  }
 0x46f   : > { %4854 = vmatpush3.bf16.msra.mxu0 %v5416_v25  ;;  %v5446_v25 = vld [vmem:[#allocation10 + $0x6c0] sm:$0xff]  }
 0x470   : > { %4855 = vmatprep.subr.bf16.mxu0 %v5419_v27  ;;  %v2803_v27 = vpack.c.bf16 %v2798_v26, %v2798_v26 }
 0x473   : > { %4856 = vmatpush3.bf16.msra.mxu0 %v5420_v29  ;;  %v5440_v29 = vld [vmem:[#allocation10 + $0x668] sm:$0xff]  }
 0x474   : > { %4872 = vmatprep.subr.bf16.mxu0 %v5429_v32  ;;  %v5449_v32 = vld [vmem:[#allocation10 + $0x6c8] sm:$0xff]  }
 0x509   : > { %v4782_v34 = vpop.f32.mrb[28].mxu0 }
 0x50a   : > { %v4804_v35 = vpop.f32.mrb[24].mxu1  ;;  %v4783_v38 = vpop.f32.mrb[29].mxu0 }
 0x50b   : > { %v4805_v39 = vpop.f32.mrb[25].mxu1  ;;  %v4784_v40 = vadd.f32 %v4783_v38, %v4782_v34  ;;  %v4785_v42 = vpop.f32.mrb[30].mxu0  ;;  %v5451_v34 = vld [vmem:[#allocation10 + $0x710] sm:$0xff]   ;;  %v5443_v38 = vld [vmem:[#allocation10 + $0x6b8] sm:$0xff]  }
 0x50c   : > { %v4806_v41 = vadd.f32 %v4805_v39, %v4804_v35  ;;  %v4807_v43 = vpop.f32.mrb[26].mxu1  ;;  %v4786_v44 = vpop.f32.mrb[31].mxu0  ;;  %v5442_v35 = vld [vmem:[#allocation10 + $0x670] sm:$0xff]   ;;  %v5444_v39 = vld [vmem:[#allocation10 + $0x678] sm:$0xff]   ;;  %v5447_v42 = vld [vmem:[#allocation10 + $0x740] sm:$0xff]  }
 0x50d   : > { %v4808_v45 = vpop.f32.mrb[27].mxu1  ;;  %v2223_v1 = vadd.f32 %v4784_v40, %v1947_v37  ;;  %v5452_v37 = vld [vmem:[#allocation10 + $0x6d0] sm:$0xff]   ;;  %v2797_v40 = vld [vmem:[#allocation7] sm:$0x1] }
 0x50e   : > { %v5450_v43 = vld [vmem:[#allocation10 + $0x748] sm:$0xff]   ;;  %v5453_v44 = vld [vmem:[#allocation10 + $0x750] sm:$0xff]   ;;  %v5454_v45 = vld [vmem:[#allocation10 + $0x718] sm:$0xff]  }
 0x50f   : > { %v2263_v46 = vadd.f32 %v4806_v41, %v2223_v1  ;;  %v2802_v41 = vpack.c.bf16 %v2797_v40, %v2797_v40  ;;  %v5455_v1 = vld [vmem:[#allocation10 + $0x6d8] sm:$0xff]  }
 0x510   : > { %v5475_v40 = vld [vmem:[#allocation10 + $0x7d8] sm:$0xff]  }
 0x529   : > { %v2302_v47 = vpop.f32.mrb[32].mxu0 }
 0x52a   : > { %v2303_v48 = vadd.f32 %v2302_v47, %v2263_v46  ;;  %v5119_v49 = vpop.f32.mrb[33].mxu0  ;;  %v5456_v46 = vld [vmem:[#allocation10 + $0x758] sm:$0xff]   ;;  %v5457_v47 = vld [vmem:[#allocation10 + $0x720] sm:$0xff]  }
 0x52b   : > { %v2305_v51 = vpop.f32.mrb[34].mxu0  ;;  %v5459_v49 = vld [vmem:[#allocation10 + $0x760] sm:$0xff]  }
 0x52c   : > { %vm2308_vm12 = vcmp.ge.f32.partialorder %v2303_v48, 0.0  ;;  %v2309_v52 = vmul.f32 0.2, %v2303_v48  ;;  %v5120_v53 = vpop.f32.mrb[35].mxu0  ;;  %v5461_v51 = vld [vmem:[#allocation10 + $0x6e8] sm:$0xff]  }
 0x52d   : > { %v5463_v53 = vld [vmem:[#allocation10 + $0x730] sm:$0xff]  }
 0x52e   : > { %v2310_v55 = vsel %vm2308_vm12, %v2303_v48, %v2309_v52  ;;  %v5458_v48 = vld [vmem:[#allocation10 + $0x6e0] sm:$0xff]   ;;  %v5462_v52 = vld [vmem:[#allocation10 + $0x768] sm:$0xff]  }
 0x52f   : > { %v2315_v56 = vmul.f32 %v2314_v50, %v2310_v55  ;;  %v5460_v50 = vld [vmem:[#allocation10 + $0x728] sm:$0xff]   ;;  %v5466_v55 = vld [vmem:[#allocation10 + $0x738] sm:$0xff]  }
 0x531   : > { %v2320_v57 = vadd.f32 %v2319_v54, %v2315_v56  ;;  %v5464_v54 = vld [vmem:[#allocation10 + $0x6f0] sm:$0xff]  }
 0x532   : > { %v5465_v56 = vld [vmem:[#allocation10 + $0x770] sm:$0xff]  }
 0x533   : > { %2321 = vst [vmem:[#allocation6 + $0x2] sm:$0xf] %v2320_v57  ;;  %v5467_v57 = vld [vmem:[#allocation10 + $0x6f8] sm:$0xff]  }
 0x53a   : > { %v2324_v60 = vld [vmem:[#allocation6 + $0x1] ss:$2 sm:$0x3]  ;;  %v2322_v0 = vld [vmem:[#allocation6] ss:$2 sm:$0x3] }
 0x53b   : > { %v2328_v61 = vld [vmem:[#allocation6 + $0x3] ss:$2 sm:$0x3]  ;;  %v2332_v62 = vpack.c.bf16 %v2324_v60, %v2324_v60  ;;  %v2326_v2 = vld [vmem:[#allocation6 + $0x2] ss:$2 sm:$0x3]  ;;  %v2331_v3 = vpack.c.bf16 %v2322_v0, %v2322_v0 }
 0x53c   : > { %v2334_v63 = vpack.c.bf16 %v2328_v61, %v2328_v61  ;;  %v2333_v4 = vpack.c.bf16 %v2326_v2, %v2326_v2  ;;  %v2330_v17 = vld [vmem:[#allocation6 + $0x4] ss:$2 sm:$0x3]  ;;  %v2801_v60 = vld [vmem:[#allocation7 + $0x4] sm:$0x1] }
 0x53d   : > { %2695 = vmatprep.mubr.bf16.mxu1 %v2332_v62  ;;  %v2335_v18 = vpack.c.bf16 %v2330_v17, %v2330_v17  ;;  %v5469_v61 = vld [vmem:[#allocation10 + $0x7c0] sm:$0xff]   ;;  %v2806_v62 = vpack.c.bf16 %v2801_v60, %v2801_v60  ;;  %v5488_v2 = vld [vmem:[#allocation10 + $0x848] sm:$0xff]   ;;  %v5492_v60 = vld [vmem:[#allocation10 + $0x810] sm:$0xff]  }
 0x53e   : > { %2735 = vmatprep.mubr.bf16.mxu0 %v2334_v63  ;;  %2696 = vmatmul.mubr.bf16.vlgmr.msra.gmra.mrb[28].mxu1 %v2331_v3  ;;  %v5485_v63 = vld [vmem:[#allocation10 + $0x840] sm:$0xff]   ;;  %v5489_v3 = vld [vmem:[#allocation10 + $0x808] sm:$0xff]  }
 0x53f   : > { %2736 = vmatmul.mubr.bf16.vlgmr.msra.gmra.mrb[36].mxu0 %v2333_v4  ;;  %5122 = vmatpush3.bf16.msra.mxu1 %v5421_v59  ;;  %v5468_v59 = vld [vmem:[#allocation10 + $0x778] sm:$0xff]   ;;  %v5486_v0 = vld [vmem:[#allocation10 + $0x800] sm:$0xff]  }
 0x540   : > { %5137 = vmatprep.mubr.msk.bf16.mxu1 %vm5594_vm8, %v5593_v36  ;;  %5123 = vmatprep.subr.bf16.mxu1 %v5593_v36  ;;  %v4422_v4 = vld [vmem:[%s5828_s2 + $0x10] sm:$0x7] }
 0x541   : > { %4873 = vmatpush3.bf16.msra.mxu0 %v5430_v5  ;;  %3162 = vmatprep.mubr.bf16.mxu0 %v2803_v27 }
 0x542   : > { %4874 = vmatprep.subr.bf16.mxu0 %v5431_v6 }
 0x543   : > { %5124 = vmatpush3.bf16.msra.mxu1 %v5422_v7  ;;  %v2422_v7 = vrot.slane %v4422_v4, %v5694_v58  ;;  %v2794_v58 = vrot.slane %v4422_v4, %v5704_v31  ;;  %v5474_v31 = vld [vmem:[#allocation10 + $0x790] sm:$0xff]  }
 0x544   : > { %5125 = vmatprep.subr.bf16.mxu1 %v5593_v36 }
 0x545   : > { %4875 = vmatpush3.bf16.msra.mxu0 %v5432_v8 }
 0x546   : > { %4876 = vmatprep.subr.bf16.mxu0 %v5433_v9 }
 0x547   : > { %5126 = vmatpush3.bf16.msra.mxu1 %v5423_v10 }
 0x548   : > { %5127 = vmatprep.subr.bf16.mxu1 %v5593_v36 }
 0x549   : > { %4877 = vmatpush3.bf16.msra.mxu0 %v5434_v11 }
 0x54a   : > { %4878 = vmatprep.subr.bf16.mxu0 %v5435_v19 }
 0x54b   : > { %5128 = vmatpush3.bf16.msra.mxu1 %v5424_v12 }
 0x54c   : > { %5129 = vmatprep.subr.bf16.mxu1 %v5593_v36 }
 0x54d   : > { %4879 = vmatpush3.bf16.msra.mxu0 %v5436_v20 }
 0x54e   : > { %4880 = vmatprep.subr.bf16.mxu0 %v5437_v21  ;;  %v2789_v21 = vrot.slane %v4422_v4, %v5701_v30  ;;  %v5472_v30 = vld [vmem:[#allocation10 + $0x788] sm:$0xff]  }
 0x54f   : > { %5130 = vmatpush3.bf16.msra.mxu1 %v5425_v13 }
 0x550   : > { %5131 = vmatprep.subr.bf16.mxu1 %v5593_v36 }
 0x551   : > { %4881 = vmatpush3.bf16.msra.mxu0 %v5438_v22 }
 0x552   : > { %4882 = vmatprep.subr.bf16.mxu0 %v5439_v23 }
 0x553   : > { %5132 = vmatpush3.bf16.msra.mxu1 %v5426_v14 }
 0x554   : > { %5133 = vmatprep.subr.bf16.mxu1 %v5593_v36 }
 0x555   : > { %4883 = vmatpush3.bf16.msra.mxu0 %v5440_v29 }
 0x556   : > { %4884 = vmatprep.subr.bf16.mxu0 %v5441_v33 }
 0x557   : > { %5134 = vmatpush3.bf16.msra.mxu1 %v5427_v15 }
 0x558   : > { %5135 = vmatprep.subr.bf16.mxu1 %v5593_v36 }
 0x559   : > { %4885 = vmatpush3.bf16.msra.mxu0 %v5442_v35  ;;  %v5470_v35 = vld [vmem:[#allocation10 + $0x780] sm:$0xff]  }
 0x55a   : > { %4886 = vmatprep.subr.bf16.mxu0 %v5443_v38  ;;  %v5471_v38 = vld [vmem:[#allocation10 + $0x7c8] sm:$0xff]  }
 0x55b   : > { %5136 = vmatpush3.bf16.msra.mxu1 %v5428_v16 }
 0x55c   : > { %4894 = vmatprep.subr.bf16.mxu1 %v5445_v24 }
 0x55d   : > { %4887 = vmatpush3.bf16.msra.mxu0 %v5444_v39  ;;  %v5473_v39 = vld [vmem:[#allocation10 + $0x7d0] sm:$0xff]  }
 0x55e   : > { %5138 = vmatmul.mubr.bf16.vlgmr.msra.gmra.mrb[32].mxu1 %v2335_v18  ;;  %5141 = vmatprep.subr.bf16.mxu0 %v5593_v36 }
 0x55f   : > { %4895 = vmatpush3.bf16.msra.mxu1 %v5446_v25 }
 0x560   : > { %4896 = vmatprep.subr.bf16.mxu1 %v5448_v28  ;;  %3163 = vmatmul.mubr.bf16.vlgmr.msra.gmra.mrb[40].mxu0 %v2802_v41  ;;  %v3262_v28 = vld [vmem:[#allocation8 + $0x1] sm:$0x1]  ;;  %v5476_v41 = vld [vmem:[#allocation10 + $0x798] sm:$0xff]  }
 0x561   : > { %5142 = vmatpush3.bf16.msra.mxu0 %v5447_v42  ;;  %5157 = vmatprep.mubr.msk.bf16.mxu0 %vm5594_vm8, %v5593_v36  ;;  %v5477_v42 = vld [vmem:[#allocation10 + $0x7e0] sm:$0xff]  }
 0x562   : > { %5143 = vmatprep.subr.bf16.mxu0 %v5593_v36 }
 0x563   : > { %4897 = vmatpush3.bf16.msra.mxu1 %v5449_v32 }
 0x564   : > { %4898 = vmatprep.subr.bf16.mxu1 %v5451_v34 }
 0x565   : > { %5144 = vmatpush3.bf16.msra.mxu0 %v5450_v43  ;;  %v5478_v43 = vld [vmem:[#allocation10 + $0x7a0] sm:$0xff]  }
 0x566   : > { %5145 = vmatprep.subr.bf16.mxu0 %v5593_v36 }
 0x567   : > { %4899 = vmatpush3.bf16.msra.mxu1 %v5452_v37  ;;  %v3267_v37 = vpack.c.bf16 %v3262_v28, %v3262_v28 }
 0x568   : > { %4900 = vmatprep.subr.bf16.mxu1 %v5454_v45  ;;  %v5480_v45 = vld [vmem:[#allocation10 + $0x7a8] sm:$0xff]  }
 0x569   : > { %5146 = vmatpush3.bf16.msra.mxu0 %v5453_v44  ;;  %v5479_v44 = vld [vmem:[#allocation10 + $0x7e8] sm:$0xff]  }
 0x56a   : > { %5147 = vmatprep.subr.bf16.mxu0 %v5593_v36 }
 0x56b   : > { %4901 = vmatpush3.bf16.msra.mxu1 %v5455_v1  ;;  %v5481_v1 = vld [vmem:[#allocation10 + $0x7f0] sm:$0xff]  }
 0x56c   : > { %4902 = vmatprep.subr.bf16.mxu1 %v5457_v47  ;;  %v5483_v47 = vld [vmem:[#allocation10 + $0x7f8] sm:$0xff]  }
 0x56d   : > { %5148 = vmatpush3.bf16.msra.mxu0 %v5456_v46  ;;  %v5482_v46 = vld [vmem:[#allocation10 + $0x7b0] sm:$0xff]  }
 0x56e   : > { %5149 = vmatprep.subr.bf16.mxu0 %v5593_v36 }
 0x56f   : > { %4903 = vmatpush3.bf16.msra.mxu1 %v5458_v48  ;;  %v5484_v48 = vld [vmem:[#allocation10 + $0x7b8] sm:$0xff]  }
 0x570   : > { %4904 = vmatprep.subr.bf16.mxu1 %v5460_v50 }
 0x571   : > { %5150 = vmatpush3.bf16.msra.mxu0 %v5459_v49  ;;  %v3261_v49 = vld [vmem:[#allocation8] sm:$0x1] }
 0x572   : > { %5151 = vmatprep.subr.bf16.mxu0 %v5593_v36  ;;  %v3266_v50 = vpack.c.bf16 %v3261_v49, %v3261_v49  ;;  %v5514_v49 = vld [vmem:[#allocation10 + $0x8d0] sm:$0xff]  }
 0x573   : > { %4905 = vmatpush3.bf16.msra.mxu1 %v5461_v51  ;;  %v5487_v51 = vld [vmem:[#allocation10 + $0x880] sm:$0xff]  }
 0x574   : > { %4906 = vmatprep.subr.bf16.mxu1 %v5463_v53 }
 0x575   : > { %5152 = vmatpush3.bf16.msra.mxu0 %v5462_v52 }
 0x576   : > { %5153 = vmatprep.subr.bf16.mxu0 %v5593_v36 }
 0x577   : > { %4907 = vmatpush3.bf16.msra.mxu1 %v5464_v54 }
 0x578   : > { %4908 = vmatprep.subr.bf16.mxu1 %v5466_v55 }
 0x579   : > { %5154 = vmatpush3.bf16.msra.mxu0 %v5465_v56 }
 0x57a   : > { %5155 = vmatprep.subr.bf16.mxu0 %v5593_v36 }
 0x57b   : > { %4909 = vmatpush3.bf16.msra.mxu1 %v5467_v57  ;;  %v5490_v57 = vld [vmem:[#allocation10 + $0x888] sm:$0xff]  }
 0x57c   : > { %4925 = vmatprep.subr.bf16.mxu1 %v5469_v61 }
 0x57d   : > { %5156 = vmatpush3.bf16.msra.mxu0 %v5468_v59  ;;  %v5491_v59 = vld [vmem:[#allocation10 + $0x850] sm:$0xff]  }
 0x57e   : > { %4947 = vmatprep.subr.bf16.mxu0 %v5485_v63 }
 0x580   : > { %5158 = vmatmul.mubr.bf16.vlgmr.msra.gmra.mrb[44].mxu0 %v2806_v62  ;;  %v5493_v62 = vld [vmem:[#allocation10 + $0x890] sm:$0xff]  }
 0x581   : > { %4948 = vmatpush3.bf16.msra.mxu0 %v5486_v0  ;;  %v5494_v0 = vld [vmem:[#allocation10 + $0x858] sm:$0xff]  }
 0x582   : > { %4949 = vmatprep.subr.bf16.mxu0 %v5488_v2 }
 0x585   : > { %4950 = vmatpush3.bf16.msra.mxu0 %v5489_v3  ;;  %v5495_v3 = vld [vmem:[#allocation10 + $0x818] sm:$0xff]  }
 0x586   : > { %4951 = vmatprep.subr.bf16.mxu0 %v5491_v59  ;;  %v5518_v59 = vld [vmem:[#allocation10 + $0x8e0] sm:$0xff]  }
 0x589   : > { %4952 = vmatpush3.bf16.msra.mxu0 %v5492_v60  ;;  %v5519_v60 = vld [vmem:[#allocation10 + $0x928] sm:$0xff]  }
 0x58a   : > { %4953 = vmatprep.subr.bf16.mxu0 %v5494_v0  ;;  %v5523_v0 = vld [vmem:[#allocation10 + $0x938] sm:$0xff]  }
 0x58d   : > { %4954 = vmatpush3.bf16.msra.mxu0 %v5495_v3  ;;  %v3725_v3 = vld [vmem:[#allocation9] sm:$0x1] }
 0x611   : > { %v4835_v5 = vpop.f32.mrb[28].mxu1 }
 0x612   : > { %v4857_v6 = vpop.f32.mrb[36].mxu0  ;;  %v4836_v8 = vpop.f32.mrb[29].mxu1 }
 0x613   : > { %v4858_v9 = vpop.f32.mrb[37].mxu0  ;;  %v4837_v10 = vadd.f32 %v4836_v8, %v4835_v5  ;;  %v4838_v12 = vpop.f32.mrb[30].mxu1  ;;  %v5496_v5 = vld [vmem:[#allocation10 + $0x898] sm:$0xff]   ;;  %v5499_v8 = vld [vmem:[#allocation10 + $0x8a0] sm:$0xff]  }
 0x614   : > { %v4859_v11 = vadd.f32 %v4858_v9, %v4857_v6  ;;  %v4860_v13 = vpop.f32.mrb[38].mxu0  ;;  %v4839_v14 = vpop.f32.mrb[31].mxu1  ;;  %v5497_v6 = vld [vmem:[#allocation10 + $0x860] sm:$0xff]   ;;  %v5500_v9 = vld [vmem:[#allocation10 + $0x868] sm:$0xff]   ;;  %v5503_v12 = vld [vmem:[#allocation10 + $0x870] sm:$0xff]  }
 0x615   : > { %v4861_v15 = vpop.f32.mrb[39].mxu0  ;;  %v2698_v16 = vadd.f32 %v4837_v10, %v2422_v7  ;;  %v5498_v7 = vld [vmem:[#allocation10 + $0x820] sm:$0xff]   ;;  %4955 = vmatprep.subr.bf16.mxu0 %v5497_v6  ;;  %v5501_v10 = vld [vmem:[#allocation10 + $0x828] sm:$0xff]   ;;  %v5504_v13 = vld [vmem:[#allocation10 + $0x830] sm:$0xff]  }
 0x616   : > { %4956 = vmatpush3.bf16.msra.mxu0 %v5498_v7  ;;  %v5506_v14 = vld [vmem:[#allocation10 + $0x878] sm:$0xff]   ;;  %v5505_v15 = vld [vmem:[#allocation10 + $0x8b0] sm:$0xff]   ;;  %v5530_v6 = vld [vmem:[#allocation10 + $0x9c8] sm:$0xff]  }
 0x617   : > { %v2738_v17 = vadd.f32 %v4859_v11, %v2698_v16  ;;  %4957 = vmatprep.subr.bf16.mxu0 %v5500_v9  ;;  %v5502_v11 = vld [vmem:[#allocation10 + $0x8a8] sm:$0xff]   ;;  %v3264_v16 = vld [vmem:[#allocation8 + $0x3] sm:$0x1] }
 0x618   : > { %v5531_v7 = vld [vmem:[#allocation10 + $0x990] sm:$0xff]  }
 0x61a   : > { %4958 = vmatpush3.bf16.msra.mxu0 %v5501_v10  ;;  %v5533_v10 = vld [vmem:[#allocation10 + $0x9d0] sm:$0xff]  }
 0x61b   : > { %4959 = vmatprep.subr.bf16.mxu0 %v5503_v12  ;;  %v5534_v12 = vld [vmem:[#allocation10 + $0x998] sm:$0xff]  }
 0x61e   : > { %4960 = vmatpush3.bf16.msra.mxu0 %v5504_v13 }
 0x61f   : > { %4961 = vmatprep.subr.bf16.mxu0 %v5506_v14  ;;  %v5535_v14 = vld [vmem:[#allocation10 + $0x958] sm:$0xff]  }
 0x631   : > { %v2777_v18 = vpop.f32.mrb[32].mxu1 }
 0x632   : > { %v2778_v19 = vadd.f32 %v2777_v18, %v2738_v17  ;;  %v5139_v20 = vpop.f32.mrb[33].mxu1  ;;  %v3269_v17 = vpack.c.bf16 %v3264_v16, %v3264_v16  ;;  %v5507_v18 = vld [vmem:[#allocation10 + $0x838] sm:$0xff]  }
 0x633   : > { %v2780_v22 = vpop.f32.mrb[34].mxu1  ;;  %v4888_v52 = vpop.f32.mrb[40].mxu0  ;;  %4962 = vmatpush3.bf16.msra.mxu0 %v5507_v18  ;;  %v3265_v20 = vld [vmem:[#allocation8 + $0x4] sm:$0x1]  ;;  %v5536_v16 = vld [vmem:[#allocation10 + $0x9d8] sm:$0xff]   ;;  %v5538_v18 = vld [vmem:[#allocation10 + $0x960] sm:$0xff]  }
 0x634   : > { %vm2783_vm13 = vcmp.ge.f32.partialorder %v2778_v19, 0.0  ;;  %v2784_v23 = vmul.f32 0.2, %v2778_v19  ;;  %v5140_v24 = vpop.f32.mrb[35].mxu1  ;;  %v4889_v53 = vpop.f32.mrb[41].mxu0  ;;  %3666 = vmatprep.mubr.bf16.mxu0 %v3269_v17  ;;  %v3270_v22 = vpack.c.bf16 %v3265_v20, %v3265_v20  ;;  %v5537_v17 = vld [vmem:[#allocation10 + $0x9a0] sm:$0xff]  }
 0x635   : > { %v5785_v54 = vadd.f32 %v4889_v53, %v4888_v52  ;;  %v4891_v55 = vpop.f32.mrb[42].mxu0  ;;  %v5526_v24 = vld [vmem:[#allocation10 + $0x940] sm:$0xff]   ;;  %v5540_v20 = vld [vmem:[#allocation10 + $0x9a8] sm:$0xff]  }
 0x636   : > { %v2785_v25 = vsel %vm2783_vm13, %v2778_v19, %v2784_v23  ;;  %v4892_v56 = vpop.f32.mrb[43].mxu0  ;;  %v5508_v19 = vld [vmem:[#allocation10 + $0x8b8] sm:$0xff]   ;;  %v5525_v23 = vld [vmem:[#allocation10 + $0x980] sm:$0xff]  }
 0x637   : > { %v2790_v26 = vmul.f32 %v2789_v21, %v2785_v25  ;;  %v5509_v21 = vld [vmem:[#allocation10 + $0x900] sm:$0xff]   ;;  %v5529_v25 = vld [vmem:[#allocation10 + $0x948] sm:$0xff]   ;;  %v5516_v55 = vld [vmem:[#allocation10 + $0x8d8] sm:$0xff]  }
 0x638   : > { %4978 = vmatprep.subr.bf16.mxu0 %v5509_v21  ;;  %v5541_v21 = vld [vmem:[#allocation10 + $0x968] sm:$0xff]  }
 0x639   : > { %v2795_v27 = vadd.f32 %v2794_v58, %v2790_v26  ;;  %v5528_v58 = vld [vmem:[#allocation10 + $0x988] sm:$0xff]   ;;  %v4463_v26 = vld [vmem:[%s5828_s2 + $0x14] sm:$0x7] }
 0x63b   : > { %2796 = vst [vmem:[#allocation7 + $0x2] sm:$0x3] %v2795_v27 }
 0x642   : > { %v2800_v29 = vld [vmem:[#allocation7 + $0x3] sm:$0x1]  ;;  %v2799_v32 = vld [vmem:[#allocation7 + $0x2] sm:$0x1] }
 0x643   : > { %v2805_v33 = vpack.c.bf16 %v2800_v29, %v2800_v29  ;;  %v2804_v34 = vpack.c.bf16 %v2799_v32, %v2799_v32  ;;  %v3165_v29 = vadd.f32 %v5785_v54, %v4463_v26 }
 0x645   : > { %3202 = vmatprep.mubr.bf16.mxu1 %v2805_v33 }
 0x646   : > { %3203 = vmatmul.mubr.bf16.vlgmr.msra.gmra.mrb[36].mxu1 %v2804_v34 }
 0x647   : > { %4926 = vmatpush3.bf16.msra.mxu1 %v5470_v35  ;;  %3626 = vmatprep.mubr.bf16.mxu1 %v3267_v37 }
 0x648   : > { %4927 = vmatprep.subr.bf16.mxu1 %v5471_v38  ;;  %v3254_v38 = vrot.slane %v4463_v26, 1 }
 0x64b   : > { %4928 = vmatpush3.bf16.msra.mxu1 %v5472_v30 }
 0x64c   : > { %4929 = vmatprep.subr.bf16.mxu1 %v5473_v39  ;;  %v3257_v39 = vrot.slane %v4463_v26, 2  ;;  %v3728_v26 = vld [vmem:[#allocation9 + $0x3] sm:$0x1] }
 0x64f   : > { %4930 = vmatpush3.bf16.msra.mxu1 %v5474_v31 }
 0x650   : > { %4931 = vmatprep.subr.bf16.mxu1 %v5475_v40 }
 0x653   : > { %4932 = vmatpush3.bf16.msra.mxu1 %v5476_v41  ;;  %v5788_v61 = vpop.f32.mrb[44].mxu0 }
 0x654   : > { %4933 = vmatprep.subr.bf16.mxu1 %v5477_v42  ;;  %v5159_v63 = vpop.f32.mrb[45].mxu0  ;;  %v3726_v42 = vld [vmem:[#allocation9 + $0x1] sm:$0x1] }
 0x655   : > { %v3247_v2 = vpop.f32.mrb[46].mxu0  ;;  %v5522_v63 = vld [vmem:[#allocation10 + $0x8f0] sm:$0xff]  }
 0x656   : > { %v5160_v4 = vpop.f32.mrb[47].mxu0  ;;  %v5524_v2 = vld [vmem:[#allocation10 + $0x8f8] sm:$0xff]  }
 0x657   : > { %4934 = vmatpush3.bf16.msra.mxu1 %v5478_v43  ;;  %v3730_v4 = vpack.c.bf16 %v3725_v3, %v3725_v3 }
 0x658   : > { %4935 = vmatprep.subr.bf16.mxu1 %v5479_v44  ;;  %v5510_v44 = vld [vmem:[#allocation10 + $0x8c0] sm:$0xff]  }
 0x65b   : > { %4936 = vmatpush3.bf16.msra.mxu1 %v5480_v45  ;;  %v3731_v45 = vpack.c.bf16 %v3726_v42, %v3726_v42 }
 0x65c   : > { %4937 = vmatprep.subr.bf16.mxu1 %v5481_v1 }
 0x65f   : > { %4938 = vmatpush3.bf16.msra.mxu1 %v5482_v46  ;;  %v5511_v46 = vld [vmem:[#allocation10 + $0x908] sm:$0xff]  }
 0x660   : > { %4939 = vmatprep.subr.bf16.mxu1 %v5483_v47  ;;  %v5512_v47 = vld [vmem:[#allocation10 + $0x8c8] sm:$0xff]  }
 0x663   : > { %4940 = vmatpush3.bf16.msra.mxu1 %v5484_v48  ;;  %v5513_v48 = vld [vmem:[#allocation10 + $0x910] sm:$0xff]  }
 0x664   : > { %5161 = vmatprep.subr.bf16.mxu1 %v5593_v36 }
 0x666   : > { %3627 = vmatmul.mubr.bf16.vlgmr.msra.gmra.mrb[40].mxu1 %v3266_v50  ;;  %v5515_v50 = vld [vmem:[#allocation10 + $0x918] sm:$0xff]  }
 0x667   : > { %5162 = vmatpush3.bf16.msra.mxu1 %v5487_v51  ;;  %5177 = vmatprep.mubr.msk.bf16.mxu1 %vm5594_vm8, %v5593_v36 }
 0x668   : > { %5163 = vmatprep.subr.bf16.mxu1 %v5593_v36 }
 0x66b   : > { %5164 = vmatpush3.bf16.msra.mxu1 %v5490_v57  ;;  %v5517_v57 = vld [vmem:[#allocation10 + $0x920] sm:$0xff]  }
 0x66c   : > { %5165 = vmatprep.subr.bf16.mxu1 %v5593_v36 }
 0x66f   : > { %5166 = vmatpush3.bf16.msra.mxu1 %v5493_v62  ;;  %v5521_v62 = vld [vmem:[#allocation10 + $0x930] sm:$0xff]  }
 0x670   : > { %5167 = vmatprep.subr.bf16.mxu1 %v5593_v36 }
 0x673   : > { %5168 = vmatpush3.bf16.msra.mxu1 %v5496_v5  ;;  %v5527_v5 = vld [vmem:[#allocation10 + $0x9c0] sm:$0xff]  }
 0x674   : > { %5169 = vmatprep.subr.bf16.mxu1 %v5593_v36 }
 0x677   : > { %5170 = vmatpush3.bf16.msra.mxu1 %v5499_v8  ;;  %v5532_v8 = vld [vmem:[#allocation10 + $0x950] sm:$0xff]  }
 0x678   : > { %5171 = vmatprep.subr.bf16.mxu1 %v5593_v36 }
 0x67b   : > { %5172 = vmatpush3.bf16.msra.mxu1 %v5502_v11 }
 0x67c   : > { %5173 = vmatprep.subr.bf16.mxu1 %v5593_v36 }
 0x67f   : > { %5174 = vmatpush3.bf16.msra.mxu1 %v5505_v15 }
 0x680   : > { %5175 = vmatprep.subr.bf16.mxu1 %v5593_v36 }
 0x683   : > { %5176 = vmatpush3.bf16.msra.mxu1 %v5508_v19  ;;  %v5539_v19 = vld [vmem:[#allocation10 + $0x9e0] sm:$0xff]  }
 0x684   : > { %5000 = vmatprep.subr.bf16.mxu1 %v5525_v23  ;;  %v5543_v23 = vld [vmem:[#allocation10 + $0x9b0] sm:$0xff]  }
 0x686   : > { %5178 = vmatmul.mubr.bf16.vlgmr.msra.gmra.mrb[44].mxu1 %v3270_v22  ;;  %v5542_v22 = vld [vmem:[#allocation10 + $0x9e8] sm:$0xff]  }
 0x687   : > { %5001 = vmatpush3.bf16.msra.mxu1 %v5526_v24  ;;  %v5544_v24 = vld [vmem:[#allocation10 + $0x970] sm:$0xff]  }
 0x688   : > { %5002 = vmatprep.subr.bf16.mxu1 %v5528_v58  ;;  %v5546_v58 = vld [vmem:[#allocation10 + $0x9b8] sm:$0xff]  }
 0x68b   : > { %5003 = vmatpush3.bf16.msra.mxu1 %v5529_v25  ;;  %v5545_v25 = vld [vmem:[#allocation10 + $0x9f0] sm:$0xff]  }
 0x68c   : > { %5004 = vmatprep.subr.bf16.mxu1 %v5531_v7 }
 0x68f   : > { %5005 = vmatpush3.bf16.msra.mxu1 %v5532_v8 }
 0x690   : > { %5006 = vmatprep.subr.bf16.mxu1 %v5534_v12 }
 0x693   : > { %5007 = vmatpush3.bf16.msra.mxu1 %v5535_v14 }
 0x694   : > { %5008 = vmatprep.subr.bf16.mxu1 %v5537_v17 }
 0x697   : > { %5009 = vmatpush3.bf16.msra.mxu1 %v5538_v18 }
 0x698   : > { %5010 = vmatprep.subr.bf16.mxu1 %v5540_v20 }
 0x69b   : > { %5011 = vmatpush3.bf16.msra.mxu1 %v5541_v21 }
 0x69c   : > { %5012 = vmatprep.subr.bf16.mxu1 %v5543_v23 }
 0x69f   : > { %5013 = vmatpush3.bf16.msra.mxu1 %v5544_v24 }
 0x6a0   : > { %5014 = vmatprep.subr.bf16.mxu1 %v5546_v58 }
 0x719   : > { %v4910_v27 = vpop.f32.mrb[36].mxu1 }
 0x71a   : > { %v4911_v28 = vpop.f32.mrb[37].mxu1 }
 0x71b   : > { %v4912_v32 = vadd.f32 %v4911_v28, %v4910_v27  ;;  %v4913_v33 = vpop.f32.mrb[38].mxu1  ;;  %v3733_v27 = vpack.c.bf16 %v3728_v26, %v3728_v26  ;;  %v5547_v28 = vld [vmem:[#allocation10 + $0x978] sm:$0xff]  }
 0x71c   : > { %v4914_v34 = vpop.f32.mrb[39].mxu1  ;;  %5015 = vmatpush3.bf16.msra.mxu1 %v5547_v28 }
 0x71d   : > { %v3205_v35 = vadd.f32 %v4912_v32, %v3165_v29  ;;  %4130 = vmatprep.mubr.bf16.mxu1 %v3733_v27  ;;  %v5548_v29 = vld [vmem:[#allocation10 + $0x9f8] sm:$0xff]   ;;  %v4504_v34 = vld [vmem:[%s5828_s2 + $0x18] sm:$0x7] }
 0x71e   : > { %v3729_v32 = vld [vmem:[#allocation9 + $0x4] sm:$0x1]  ;;  %v3718_v42 = vrot.slane %v4504_v34, 1 }
 0x71f   : > { %v3245_v37 = vadd.f32 %v5788_v61, %v3205_v35  ;;  %v5520_v61 = vld [vmem:[#allocation10 + $0x8e8] sm:$0xff]   ;;  %v3734_v33 = vpack.c.bf16 %v3729_v32, %v3729_v32 }
 0x721   : > { %vm3250_vm14 = vcmp.ge.f32.partialorder %v3245_v37, 0.0  ;;  %v3251_v30 = vmul.f32 0.2, %v3245_v37 }
 0x723   : > { %v3252_v31 = vsel %vm3250_vm14, %v3245_v37, %v3251_v30 }
 0x724   : > { %v3256_v40 = vmul.f32 %v3254_v38, %v3252_v31 }
 0x726   : > { %v3259_v41 = vadd.f32 %v3257_v39, %v3256_v40 }
 0x728   : > { %3260 = vst [vmem:[#allocation8 + $0x2] sm:$0x1] %v3259_v41 }
 0x72f   : > { %v3263_v43 = vld [vmem:[#allocation8 + $0x2] sm:$0x1] }
 0x730   : > { %v3268_v1 = vpack.c.bf16 %v3263_v43, %v3263_v43  ;;  %v3721_v43 = vrot.slane %v4504_v34, 2 }
 0x732   : > { %3667 = vmatmul.mubr.bf16.vlgmr.msra.gmra.mrb[48].mxu0 %v3268_v1 }
 0x733   : > { %4979 = vmatpush3.bf16.msra.mxu0 %v5510_v44  ;;  %4090 = vmatprep.mubr.bf16.mxu0 %v3731_v45 }
 0x734   : > { %4980 = vmatprep.subr.bf16.mxu0 %v5511_v46 }
 0x737   : > { %4981 = vmatpush3.bf16.msra.mxu0 %v5512_v47 }
 0x738   : > { %4982 = vmatprep.subr.bf16.mxu0 %v5513_v48 }
 0x739   : > { %v4941_v51 = vpop.f32.mrb[40].mxu1 }
 0x73a   : > { %v4942_v52 = vpop.f32.mrb[41].mxu1 }
 0x73b   : > { %v5800_v53 = vadd.f32 %v4942_v52, %v4941_v51  ;;  %4983 = vmatpush3.bf16.msra.mxu0 %v5514_v49  ;;  %v4944_v54 = vpop.f32.mrb[42].mxu1 }
 0x73c   : > { %v4945_v56 = vpop.f32.mrb[43].mxu1  ;;  %4984 = vmatprep.subr.bf16.mxu0 %v5515_v50 }
 0x73d   : > { %v3629_v38 = vadd.f32 %v5800_v53, %v4504_v34 }
 0x73f   : > { %4985 = vmatpush3.bf16.msra.mxu0 %v5516_v55 }
 0x740   : > { %4986 = vmatprep.subr.bf16.mxu0 %v5517_v57  ;;  %v4545_v57 = vld [vmem:[%s5828_s2 + $0x1c] sm:$0x7] }
 0x743   : > { %4987 = vmatpush3.bf16.msra.mxu0 %v5518_v59 }
 0x744   : > { %4988 = vmatprep.subr.bf16.mxu0 %v5519_v60 }
 0x747   : > { %4989 = vmatpush3.bf16.msra.mxu0 %v5520_v61 }
 0x748   : > { %4990 = vmatprep.subr.bf16.mxu0 %v5521_v62 }
 0x74b   : > { %4991 = vmatpush3.bf16.msra.mxu0 %v5522_v63 }
 0x74c   : > { %4992 = vmatprep.subr.bf16.mxu0 %v5523_v0 }
 0x74f   : > { %4993 = vmatpush3.bf16.msra.mxu0 %v5524_v2 }
 0x750   : > { %5181 = vmatprep.subr.bf16.mxu0 %v5593_v36 }
 0x752   : > { %4091 = vmatmul.mubr.bf16.vlgmr.msra.gmra.mrb[52].mxu0 %v3730_v4 }
 0x753   : > { %5182 = vmatpush3.bf16.msra.mxu0 %v5527_v5  ;;  %5197 = vmatprep.mubr.msk.bf16.mxu0 %vm5594_vm8, %v5593_v36 }
 0x754   : > { %5183 = vmatprep.subr.bf16.mxu0 %v5593_v36 }
 0x757   : > { %5184 = vmatpush3.bf16.msra.mxu0 %v5530_v6 }
 0x758   : > { %5185 = vmatprep.subr.bf16.mxu0 %v5593_v36 }
 0x759   : > { %v3708_v9 = vpop.f32.mrb[44].mxu1 }
 0x75a   : > { %v5179_v11 = vpop.f32.mrb[45].mxu1 }
 0x75b   : > { %v3711_v13 = vpop.f32.mrb[46].mxu1  ;;  %5186 = vmatpush3.bf16.msra.mxu0 %v5533_v10 }
 0x75c   : > { %v5180_v15 = vpop.f32.mrb[47].mxu1  ;;  %5187 = vmatprep.subr.bf16.mxu0 %v5593_v36 }
 0x75f   : > { %5188 = vmatpush3.bf16.msra.mxu0 %v5536_v16 }
 0x760   : > { %5189 = vmatprep.subr.bf16.mxu0 %v5593_v36 }
 0x763   : > { %5190 = vmatpush3.bf16.msra.mxu0 %v5539_v19 }
 0x764   : > { %5191 = vmatprep.subr.bf16.mxu0 %v5593_v36 }
 0x767   : > { %5192 = vmatpush3.bf16.msra.mxu0 %v5542_v22 }
 0x768   : > { %5193 = vmatprep.subr.bf16.mxu0 %v5593_v36 }
 0x76b   : > { %5194 = vmatpush3.bf16.msra.mxu0 %v5545_v25 }
 0x76c   : > { %5195 = vmatprep.subr.bf16.mxu0 %v5593_v36 }
 0x76f   : > { %5196 = vmatpush3.bf16.msra.mxu0 %v5548_v29 }
 0x772   : > { %5198 = vmatmul.mubr.bf16.vlgmr.msra.gmra.mrb[56].mxu0 %v3734_v33 }
 0x805   : > { %v4963_v35 = vpop.f32.mrb[48].mxu0 }
 0x806   : > { %v4964_v37 = vpop.f32.mrb[49].mxu0 }
 0x807   : > { %v4965_v30 = vadd.f32 %v4964_v37, %v4963_v35  ;;  %v4966_v39 = vpop.f32.mrb[50].mxu0 }
 0x808   : > { %v4967_v31 = vpop.f32.mrb[51].mxu0 }
 0x809   : > { %v3669_v40 = vadd.f32 %v4965_v30, %v3629_v38 }
 0x80b   : > { %v3709_v41 = vadd.f32 %v3708_v9, %v3669_v40 }
 0x80d   : > { %vm3714_vm15 = vcmp.ge.f32.partialorder %v3709_v41, 0.0  ;;  %v3715_v36 = vmul.f32 0.2, %v3709_v41 }
 0x80f   : > { %v3716_v44 = vsel %vm3714_vm15, %v3709_v41, %v3715_v36 }
 0x810   : > { %v3720_v45 = vmul.f32 %v3718_v42, %v3716_v44 }
 0x812   : > { %v3723_v1 = vadd.f32 %v3721_v43, %v3720_v45 }
 0x814   : > { %3724 = vst [vmem:[#allocation9 + $0x2] sm:$0x1] %v3723_v1 }
 0x81b   : > { %v3727_v46 = vld [vmem:[#allocation9 + $0x2] sm:$0x1] }
 0x81c   : > { %v3732_v47 = vpack.c.bf16 %v3727_v46, %v3727_v46 }
 0x81e   : > { %4131 = vmatmul.mubr.bf16.vlgmr.msra.gmra.mrb[48].mxu1 %v3732_v47 }
 0x825   : > { %v4994_v48 = vpop.f32.mrb[52].mxu0 }
 0x826   : > { %v4995_v49 = vpop.f32.mrb[53].mxu0 }
 0x827   : > { %v4996_v50 = vadd.f32 %v4995_v49, %v4994_v48  ;;  %v4997_v51 = vpop.f32.mrb[54].mxu0 }
 0x828   : > { %v4998_v52 = vpop.f32.mrb[55].mxu0 }
 0x829   : > { %v4093_v61 = vadd.f32 %v4996_v50, %v4545_v57 }
 0x845   : > { %v4172_v53 = vpop.f32.mrb[56].mxu0 }
 0x846   : > { %v5199_v54 = vpop.f32.mrb[57].mxu0 }
 0x847   : > { %v4175_v55 = vpop.f32.mrb[58].mxu0 }
 0x848   : > { %v5200_v56 = vpop.f32.mrb[59].mxu0 }
 0x8f1   : > { %v5016_v59 = vpop.f32.mrb[48].mxu1 }
 0x8f2   : > { %v5017_v60 = vpop.f32.mrb[49].mxu1 }
 0x8f3   : > { %v5018_v62 = vadd.f32 %v5017_v60, %v5016_v59  ;;  %v5019_v63 = vpop.f32.mrb[50].mxu1 }
 0x8f4   : > { %v5020_v0 = vpop.f32.mrb[51].mxu1 }
 0x8f5   : > { %v4133_v2 = vadd.f32 %v5018_v62, %v4093_v61 }
 0x8f7   : > { %v4173_v3 = vadd.f32 %v4172_v53, %v4133_v2 }
 0x8f9   : > { %4178 = vst [vmem:[%s181_s27] sm:$0x1] %v4173_v3 }
 0x8fa PF: > { %s14_s12 = sadd.s32 1, %s5587_s12  }
 0x8fb   : > { %p11_p3 = scmp.ge.s32.totalorder %s14_s12, 4  }
 0x8fd   :  { %13 = sbr.rel (!%p11_p3) target bundleno = 1 (0x1), region = 121 }
 0x904   :  { %4196 = vsyncpa [#allocation11], 1 }
 0x905   :  { %4198 = vsyncpa [#allocation11 + $0x1], 1 }

</bundles_post_ra>
